<compile_context>
chip_gen: v7x
topology: tpu7x:2x2x1
jax: 0.10.0
libtpu: 0.0.40
codegen_flags: <defaults>
</compile_context>

<pallas_src>
import math
import numpy as np
import jax
import jax.numpy as jnp
from jax.experimental import pallas as pl
from jax.experimental.pallas import tpu as pltpu

# ---------------- module hyper-parameters (InterfaceLoss.__init__) ----------
INTERFACE_WEIGHT = 0.5
INTERFACE_GAUSS_SIGMA = 1.0
INTERFACE_POWER = 2.0

KERNEL_SIZE = int(math.floor(INTERFACE_GAUSS_SIGMA * 3.0)) * 2 + 1   # -> 7
GAUSS_RADIUS = KERNEL_SIZE // 2                                      # -> 3
SOBEL_EPS = 1e-6   # kornia.filters.Sobel default eps
EDGE_EPS = 1e-7
MAX_GROUP = 8      # cap on planes per grid step (static in-kernel unroll)


def _gaussian_1d(window_size: int, sigma: float) -> np.ndarray:
    """Matches kornia.filters.kernels.gaussian (normalized to sum == 1)."""
    x = np.arange(window_size, dtype=np.float64) - window_size // 2
    if window_size % 2 == 0:
        x = x + 0.5
    g = np.exp(-(x ** 2) / (2.0 * sigma ** 2))
    return g / g.sum()


GAUSS_1D = _gaussian_1d(KERNEL_SIZE, INTERFACE_GAUSS_SIGMA)


# ------------- banded conv-with-padding matrices (built once, numpy) ---------
def _reflect_index(p: int, n: int) -> int:
    """torch/kornia 'reflect' padding index (boundary excluded)."""
    while p < 0 or p >= n:
        if p < 0:
            p = -p
        if p >= n:
            p = 2 * (n - 1) - p
    return p


def _replicate_index(p: int, n: int) -> int:
    """torch 'replicate' padding index."""
    return min(max(p, 0), n - 1)


def _conv_matrix(n: int, taps, radius: int, index_fn) -> np.ndarray:
    """M[i, j] = sum of tap weights t s.t. index_fn(i - radius + t) == j.

    Applying M on the left (rows) or M.T on the right (cols) is exactly the
    1-D correlation with `taps` under the given padding mode.
    """
    m = np.zeros((n, n), dtype=np.float64)
    for i in range(n):
        for t, w in enumerate(taps):
            m[i, index_fn(i - radius + t, n)] += float(w)
    return m


# ------------------------------- Pallas kernel ------------------------------
def _interface_loss_kernel(den_ref, tgt_ref, ti_ref,
                           gh_ref, gwt_ref, sv_ref, dxwt_ref, dyh_ref, shwt_ref,
                           sse_ref, edge_ref):
    f32 = jnp.float32
    gh = gh_ref[...]      # (H, H) Gaussian along H (reflect pad folded in)
    gwt = gwt_ref[...]    # (W, W) Gaussian along W, pre-transposed
    sv = sv_ref[...]      # (H, H) Sobel [1,2,1] smooth along H (replicate)
    dxwt = dxwt_ref[...]  # (W, W) Sobel [-1,0,1] diff along W (.T, * 1/8)
    dyh = dyh_ref[...]    # (H, H) Sobel [-1,0,1] diff along H (* 1/8)
    shwt = shwt_ref[...]  # (W, W) Sobel [1,2,1] smooth along W (.T)

    g = den_ref.shape[0]
    sse = jnp.zeros((1, 1), f32)
    edge_sum = jnp.zeros((1, 1), f32)

    for idx in range(g):                          # static unroll, g <= MAX_GROUP
        den = den_ref[idx].astype(f32)            # (H, W), native-dtype load
        tgt = tgt_ref[idx].astype(f32)
        ti = ti_ref[idx].astype(f32)

        # ---- data loss partial sum (MSE numerator) --------------------------
        diff = den - tgt
        sse = sse + jnp.sum(diff * diff, keepdims=True)

        # ---- Gaussian blur of target_interfaces (reflect pad) via MXU -------
        edge_w = jnp.dot(jnp.dot(gh, ti, preferred_element_type=f32), gwt,
                         preferred_element_type=f32)

        # ---- Sobel gradient magnitude of denoised (replicate pad) via MXU ---
        gx = jnp.dot(jnp.dot(sv, den, preferred_element_type=f32), dxwt,
                     preferred_element_type=f32)
        gy = jnp.dot(jnp.dot(dyh, den, preferred_element_type=f32), shwt,
                     preferred_element_type=f32)
        sobel_mag = jnp.sqrt(gx * gx + gy * gy + SOBEL_EPS)

        # ---- interface sharpness partial sum --------------------------------
        prod = jnp.abs(sobel_mag * edge_w) + EDGE_EPS
        if INTERFACE_POWER == 2.0:
            edges = prod * prod                   # VALU multiply, no exp/log
        else:
            edges = jnp.power(prod, INTERFACE_POWER)
        edge_sum = edge_sum + jnp.sum(edges, keepdims=True)

    # per-program partial sums, lane-dense (1, 8, 128) output blocks
    sse_ref[...] = jnp.broadcast_to(sse.reshape(1, 1, 1), sse_ref.shape)
    edge_ref[...] = jnp.broadcast_to(edge_sum.reshape(1, 1, 1), edge_ref.shape)


# --------------------------------- wrapper ----------------------------------
def _vmem_budget_bytes() -> int:
    """Generation-aware scoped-VMEM budget (v7x: 64 MiB/TC, v5e/v6e: 128 MiB)."""
    try:
        cap = int(pltpu.get_tpu_info().vmem_capacity_bytes)
    except Exception:
        cap = 64 << 20                      # conservative (v7x per-TC) fallback
    return max(16 << 20, min(cap * 3 // 4, 96 << 20))


def _pick_group(bc: int, h: int, w: int, itemsize: int, budget_bytes: int) -> int:
    """Planes per grid step: fit the budget, cap the unroll, keep nb >= 2."""
    per_plane = 3 * h * w * itemsize * 2                 # 3 streams x 2 buffers
    fixed = (3 * h * h + 3 * w * w) * 4 * 2              # banded matrices (x2 bufs)
    fixed += 12 * h * w * 4                              # per-plane f32 intermediates
    fixed += 2 * 8 * 128 * 4 * 2                         # partial-sum output blocks
    avail = max(budget_bytes - fixed, per_plane)
    g = int(max(1, min(bc, avail // per_plane, MAX_GROUP)))
    if bc >= 2:
        g = max(1, min(g, bc // 2))   # nb = bc//g >= 2: megacore + pipelining
    while bc % g:
        g -= 1
    return g


def interface_loss(denoised, target, target_interfaces):
    """denoised/target/target_interfaces: NCHW arrays. Returns scalar loss."""
    B, C, H, W = denoised.shape
    assert H >= 4 and W >= 4, "reflect padding with radius 3 requires H, W >= 4"

    bc = B * C
    # Native dtype, unpadded: no HBM-materialized casts or padded copies.
    den = denoised.reshape(bc, H, W)
    tgt = target.reshape(bc, H, W)
    ti = target_interfaces.reshape(bc, H, W)

    r = GAUSS_RADIUS
    # Constant banded matrices: padding + conv taps folded in, applied on MXU.
    gh = jnp.asarray(_conv_matrix(H, GAUSS_1D, r, _reflect_index), jnp.float32)
    gwt = jnp.asarray(_conv_matrix(W, GAUSS_1D, r, _reflect_index).T, jnp.float32)
    sv = jnp.asarray(_conv_matrix(H, (1.0, 2.0, 1.0), 1, _replicate_index), jnp.float32)
    dxwt = jnp.asarray(_conv_matrix(W, (-1.0, 0.0, 1.0), 1, _replicate_index).T * 0.125,
                       jnp.float32)
    dyh = jnp.asarray(_conv_matrix(H, (-1.0, 0.0, 1.0), 1, _replicate_index) * 0.125,
                      jnp.float32)
    shwt = jnp.asarray(_conv_matrix(W, (1.0, 2.0, 1.0), 1, _replicate_index).T, jnp.float32)

    budget = _vmem_budget_bytes()
    g = _pick_group(bc, H, W, den.dtype.itemsize, budget)
    nb = bc // g

    plane_spec = pl.BlockSpec((g, H, W), lambda i: (i, 0, 0))
    hmat_spec = pl.BlockSpec((H, H), lambda i: (0, 0))     # resident across grid
    wmat_spec = pl.BlockSpec((W, W), lambda i: (0, 0))
    psum_spec = pl.BlockSpec((1, 8, 128), lambda i: (i, 0, 0))

    sse_out, edge_out = pl.pallas_call(
        _interface_loss_kernel,
        grid=(nb,),
        in_specs=[
            plane_spec,            # denoised
            plane_spec,            # target
            plane_spec,            # target_interfaces
            hmat_spec, wmat_spec,  # gaussian H / W^T
            hmat_spec, wmat_spec,  # sobel smooth-H / diff-W^T
            hmat_spec, wmat_spec,  # sobel diff-H / smooth-W^T
        ],
        out_specs=[psum_spec, psum_spec],
        out_shape=[
            jax.ShapeDtypeStruct((nb, 8, 128), jnp.float32),
            jax.ShapeDtypeStruct((nb, 8, 128), jnp.float32),
        ],
        compiler_params=pltpu.CompilerParams(
            dimension_semantics=("parallel",),
            vmem_limit_bytes=int(budget),
        ),
    )(den, tgt, ti, gh, gwt, sv, dxwt, dyh, shwt)

    n_total = float(bc * H * W)
    data_loss = jnp.sum(sse_out[:, 0, 0]) / n_total                # MSE
    mean_edges = jnp.sum(edge_out[:, 0, 0]) / n_total
    interface_l = jnp.power(mean_edges, 1.0 / INTERFACE_POWER)     # scalar, in wrapper
    return data_loss + INTERFACE_WEIGHT * interface_l


# ----------------------------------- main ------------------------------------
if __name__ == "__main__":
    key = jax.random.PRNGKey(0)
    k1, k2, k3 = jax.random.split(key, 3)
    B, C, H, W = 2, 4, 16, 16
    denoised = jax.random.normal(k1, (B, C, H, W), dtype=jnp.float32)
    target = jax.random.normal(k2, (B, C, H, W), dtype=jnp.float32)
    target_interfaces = jax.random.uniform(k3, (B, C, H, W), dtype=jnp.float32)

    loss = interface_loss(denoised, target, target_interfaces)
    jax.block_until_ready(loss)
    print("KERNEL_OK")
</pallas_src>

<mosaic_0001>
module attributes {stable_mosaic.version = 11 : i64} {
  func.func @_interface_loss_kernel(%arg0: i32, %arg1: memref<4x16x16xf32, #tpu.memory_space<vmem>>, %arg2: memref<4x16x16xf32, #tpu.memory_space<vmem>>, %arg3: memref<4x16x16xf32, #tpu.memory_space<vmem>>, %arg4: memref<16x16xf32, #tpu.memory_space<vmem>>, %arg5: memref<16x16xf32, #tpu.memory_space<vmem>>, %arg6: memref<16x16xf32, #tpu.memory_space<vmem>>, %arg7: memref<16x16xf32, #tpu.memory_space<vmem>>, %arg8: memref<16x16xf32, #tpu.memory_space<vmem>>, %arg9: memref<16x16xf32, #tpu.memory_space<vmem>>, %arg10: memref<1x8x128xf32, #tpu.memory_space<vmem>>, %arg11: memref<1x8x128xf32, #tpu.memory_space<vmem>>) attributes {dimension_semantics = [#tpu.dimension_semantics<parallel>], iteration_bounds = array<i64: 2>, scalar_prefetch = 0 : i64, scratch_operands = 0 : i64, tpu.core_type = #tpu.core_type<tc>, window_params = [{transform_indices = @transform_0, window_bounds = array<i64: 4, 16, 16>}, {transform_indices = @transform_1, window_bounds = array<i64: 4, 16, 16>}, {transform_indices = @transform_2, window_bounds = array<i64: 4, 16, 16>}, {pipeline_mode = #tpu.pipeline_mode<synchronous>, transform_indices = @transform_3, window_bounds = array<i64: 16, 16>}, {pipeline_mode = #tpu.pipeline_mode<synchronous>, transform_indices = @transform_4, window_bounds = array<i64: 16, 16>}, {pipeline_mode = #tpu.pipeline_mode<synchronous>, transform_indices = @transform_5, window_bounds = array<i64: 16, 16>}, {pipeline_mode = #tpu.pipeline_mode<synchronous>, transform_indices = @transform_6, window_bounds = array<i64: 16, 16>}, {pipeline_mode = #tpu.pipeline_mode<synchronous>, transform_indices = @transform_7, window_bounds = array<i64: 16, 16>}, {pipeline_mode = #tpu.pipeline_mode<synchronous>, transform_indices = @transform_8, window_bounds = array<i64: 16, 16>}, {transform_indices = @transform_9, window_bounds = array<i64: 1, 8, 128>}, {transform_indices = @transform_10, window_bounds = array<i64: 1, 8, 128>}]} {
    %c0 = arith.constant 0 : index
    %c0_0 = arith.constant 0 : index
    %0 = vector.load %arg4[%c0, %c0_0] : memref<16x16xf32, #tpu.memory_space<vmem>>, vector<16x16xf32>
    %c0_1 = arith.constant 0 : index
    %c0_2 = arith.constant 0 : index
    %1 = vector.load %arg5[%c0_1, %c0_2] : memref<16x16xf32, #tpu.memory_space<vmem>>, vector<16x16xf32>
    %c0_3 = arith.constant 0 : index
    %c0_4 = arith.constant 0 : index
    %2 = vector.load %arg6[%c0_3, %c0_4] : memref<16x16xf32, #tpu.memory_space<vmem>>, vector<16x16xf32>
    %c0_5 = arith.constant 0 : index
    %c0_6 = arith.constant 0 : index
    %3 = vector.load %arg7[%c0_5, %c0_6] : memref<16x16xf32, #tpu.memory_space<vmem>>, vector<16x16xf32>
    %c0_7 = arith.constant 0 : index
    %c0_8 = arith.constant 0 : index
    %4 = vector.load %arg8[%c0_7, %c0_8] : memref<16x16xf32, #tpu.memory_space<vmem>>, vector<16x16xf32>
    %c0_9 = arith.constant 0 : index
    %c0_10 = arith.constant 0 : index
    %5 = vector.load %arg9[%c0_9, %c0_10] : memref<16x16xf32, #tpu.memory_space<vmem>>, vector<16x16xf32>
    %cst = arith.constant 0.000000e+00 : f32
    %6 = vector.broadcast %cst : f32 to vector<1x1xf32>
    %cst_11 = arith.constant 0.000000e+00 : f32
    %7 = vector.broadcast %cst_11 : f32 to vector<1x1xf32>
    %c0_12 = arith.constant 0 : index
    %c0_13 = arith.constant 0 : index
    %c0_14 = arith.constant 0 : index
    %8 = vector.load %arg1[%c0_12, %c0_13, %c0_14] : memref<4x16x16xf32, #tpu.memory_space<vmem>>, vector<1x16x16xf32>
    %9 = vector.shape_cast %8 : vector<1x16x16xf32> to vector<16x16xf32>
    %c0_15 = arith.constant 0 : index
    %c0_16 = arith.constant 0 : index
    %c0_17 = arith.constant 0 : index
    %10 = vector.load %arg2[%c0_15, %c0_16, %c0_17] : memref<4x16x16xf32, #tpu.memory_space<vmem>>, vector<1x16x16xf32>
    %11 = vector.shape_cast %10 : vector<1x16x16xf32> to vector<16x16xf32>
    %c0_18 = arith.constant 0 : index
    %c0_19 = arith.constant 0 : index
    %c0_20 = arith.constant 0 : index
    %12 = vector.load %arg3[%c0_18, %c0_19, %c0_20] : memref<4x16x16xf32, #tpu.memory_space<vmem>>, vector<1x16x16xf32>
    %13 = vector.shape_cast %12 : vector<1x16x16xf32> to vector<16x16xf32>
    %14 = arith.subf %9, %11 : vector<16x16xf32>
    %15 = arith.mulf %14, %14 : vector<16x16xf32>
    %16 = vector.shape_cast %15 : vector<16x16xf32> to vector<1x16x16xf32>
    %cst_21 = arith.constant dense<0.000000e+00> : vector<1xf32>
    %17 = vector.multi_reduction <add>, %16, %cst_21 [1, 2] : vector<1x16x16xf32> to vector<1xf32>
    %18 = vector.shape_cast %17 : vector<1xf32> to vector<1x1x1xf32>
    %19 = vector.extract %18[0, 0, 0] : f32 from vector<1x1x1xf32>
    %20 = vector.broadcast %19 : f32 to vector<1x1xf32>
    %21 = arith.addf %6, %20 : vector<1x1xf32>
    %cst_22 = arith.constant dense<0.000000e+00> : vector<16x16xf32>
    %22 = tpu.matmul %0, %13, %cst_22 {dimension_numbers = #tpu.dot_dimension_numbers<[1], [0], [0], [1], [0, 0, 1, 1], [], []>} : vector<16x16xf32>, vector<16x16xf32>, vector<16x16xf32> -> vector<16x16xf32>
    %cst_23 = arith.constant dense<0.000000e+00> : vector<16x16xf32>
    %23 = tpu.matmul %22, %1, %cst_23 {dimension_numbers = #tpu.dot_dimension_numbers<[1], [0], [0], [1], [0, 0, 1, 1], [], []>} : vector<16x16xf32>, vector<16x16xf32>, vector<16x16xf32> -> vector<16x16xf32>
    %cst_24 = arith.constant dense<0.000000e+00> : vector<16x16xf32>
    %24 = tpu.matmul %2, %9, %cst_24 {dimension_numbers = #tpu.dot_dimension_numbers<[1], [0], [0], [1], [0, 0, 1, 1], [], []>} : vector<16x16xf32>, vector<16x16xf32>, vector<16x16xf32> -> vector<16x16xf32>
    %cst_25 = arith.constant dense<0.000000e+00> : vector<16x16xf32>
    %25 = tpu.matmul %24, %3, %cst_25 {dimension_numbers = #tpu.dot_dimension_numbers<[1], [0], [0], [1], [0, 0, 1, 1], [], []>} : vector<16x16xf32>, vector<16x16xf32>, vector<16x16xf32> -> vector<16x16xf32>
    %cst_26 = arith.constant dense<0.000000e+00> : vector<16x16xf32>
    %26 = tpu.matmul %4, %9, %cst_26 {dimension_numbers = #tpu.dot_dimension_numbers<[1], [0], [0], [1], [0, 0, 1, 1], [], []>} : vector<16x16xf32>, vector<16x16xf32>, vector<16x16xf32> -> vector<16x16xf32>
    %cst_27 = arith.constant dense<0.000000e+00> : vector<16x16xf32>
    %27 = tpu.matmul %26, %5, %cst_27 {dimension_numbers = #tpu.dot_dimension_numbers<[1], [0], [0], [1], [0, 0, 1, 1], [], []>} : vector<16x16xf32>, vector<16x16xf32>, vector<16x16xf32> -> vector<16x16xf32>
    %28 = arith.mulf %25, %25 : vector<16x16xf32>
    %29 = arith.mulf %27, %27 : vector<16x16xf32>
    %30 = arith.addf %28, %29 : vector<16x16xf32>
    %cst_28 = arith.constant 9.99999997E-7 : f32
    %31 = vector.broadcast %cst_28 : f32 to vector<16x16xf32>
    %32 = arith.addf %30, %31 : vector<16x16xf32>
    %33 = math.sqrt %32 : vector<16x16xf32>
    %34 = arith.mulf %33, %23 : vector<16x16xf32>
    %35 = math.absf %34 : vector<16x16xf32>
    %cst_29 = arith.constant 1.000000e-07 : f32
    %36 = vector.broadcast %cst_29 : f32 to vector<16x16xf32>
    %37 = arith.addf %35, %36 : vector<16x16xf32>
    %38 = arith.mulf %37, %37 : vector<16x16xf32>
    %39 = vector.shape_cast %38 : vector<16x16xf32> to vector<1x16x16xf32>
    %cst_30 = arith.constant dense<0.000000e+00> : vector<1xf32>
    %40 = vector.multi_reduction <add>, %39, %cst_30 [1, 2] : vector<1x16x16xf32> to vector<1xf32>
    %41 = vector.shape_cast %40 : vector<1xf32> to vector<1x1x1xf32>
    %42 = vector.extract %41[0, 0, 0] : f32 from vector<1x1x1xf32>
    %43 = vector.broadcast %42 : f32 to vector<1x1xf32>
    %44 = arith.addf %7, %43 : vector<1x1xf32>
    %c1 = arith.constant 1 : index
    %c0_31 = arith.constant 0 : index
    %c0_32 = arith.constant 0 : index
    %45 = vector.load %arg1[%c1, %c0_31, %c0_32] : memref<4x16x16xf32, #tpu.memory_space<vmem>>, vector<1x16x16xf32>
    %46 = vector.shape_cast %45 : vector<1x16x16xf32> to vector<16x16xf32>
    %c1_33 = arith.constant 1 : index
    %c0_34 = arith.constant 0 : index
    %c0_35 = arith.constant 0 : index
    %47 = vector.load %arg2[%c1_33, %c0_34, %c0_35] : memref<4x16x16xf32, #tpu.memory_space<vmem>>, vector<1x16x16xf32>
    %48 = vector.shape_cast %47 : vector<1x16x16xf32> to vector<16x16xf32>
    %c1_36 = arith.constant 1 : index
    %c0_37 = arith.constant 0 : index
    %c0_38 = arith.constant 0 : index
    %49 = vector.load %arg3[%c1_36, %c0_37, %c0_38] : memref<4x16x16xf32, #tpu.memory_space<vmem>>, vector<1x16x16xf32>
    %50 = vector.shape_cast %49 : vector<1x16x16xf32> to vector<16x16xf32>
    %51 = arith.subf %46, %48 : vector<16x16xf32>
    %52 = arith.mulf %51, %51 : vector<16x16xf32>
    %53 = vector.shape_cast %52 : vector<16x16xf32> to vector<1x16x16xf32>
    %cst_39 = arith.constant dense<0.000000e+00> : vector<1xf32>
    %54 = vector.multi_reduction <add>, %53, %cst_39 [1, 2] : vector<1x16x16xf32> to vector<1xf32>
    %55 = vector.shape_cast %54 : vector<1xf32> to vector<1x1x1xf32>
    %56 = vector.extract %55[0, 0, 0] : f32 from vector<1x1x1xf32>
    %57 = vector.broadcast %56 : f32 to vector<1x1xf32>
    %58 = arith.addf %21, %57 : vector<1x1xf32>
    %cst_40 = arith.constant dense<0.000000e+00> : vector<16x16xf32>
    %59 = tpu.matmul %0, %50, %cst_40 {dimension_numbers = #tpu.dot_dimension_numbers<[1], [0], [0], [1], [0, 0, 1, 1], [], []>} : vector<16x16xf32>, vector<16x16xf32>, vector<16x16xf32> -> vector<16x16xf32>
    %cst_41 = arith.constant dense<0.000000e+00> : vector<16x16xf32>
    %60 = tpu.matmul %59, %1, %cst_41 {dimension_numbers = #tpu.dot_dimension_numbers<[1], [0], [0], [1], [0, 0, 1, 1], [], []>} : vector<16x16xf32>, vector<16x16xf32>, vector<16x16xf32> -> vector<16x16xf32>
    %cst_42 = arith.constant dense<0.000000e+00> : vector<16x16xf32>
    %61 = tpu.matmul %2, %46, %cst_42 {dimension_numbers = #tpu.dot_dimension_numbers<[1], [0], [0], [1], [0, 0, 1, 1], [], []>} : vector<16x16xf32>, vector<16x16xf32>, vector<16x16xf32> -> vector<16x16xf32>
    %cst_43 = arith.constant dense<0.000000e+00> : vector<16x16xf32>
    %62 = tpu.matmul %61, %3, %cst_43 {dimension_numbers = #tpu.dot_dimension_numbers<[1], [0], [0], [1], [0, 0, 1, 1], [], []>} : vector<16x16xf32>, vector<16x16xf32>, vector<16x16xf32> -> vector<16x16xf32>
    %cst_44 = arith.constant dense<0.000000e+00> : vector<16x16xf32>
    %63 = tpu.matmul %4, %46, %cst_44 {dimension_numbers = #tpu.dot_dimension_numbers<[1], [0], [0], [1], [0, 0, 1, 1], [], []>} : vector<16x16xf32>, vector<16x16xf32>, vector<16x16xf32> -> vector<16x16xf32>
    %cst_45 = arith.constant dense<0.000000e+00> : vector<16x16xf32>
    %64 = tpu.matmul %63, %5, %cst_45 {dimension_numbers = #tpu.dot_dimension_numbers<[1], [0], [0], [1], [0, 0, 1, 1], [], []>} : vector<16x16xf32>, vector<16x16xf32>, vector<16x16xf32> -> vector<16x16xf32>
    %65 = arith.mulf %62, %62 : vector<16x16xf32>
    %66 = arith.mulf %64, %64 : vector<16x16xf32>
    %67 = arith.addf %65, %66 : vector<16x16xf32>
    %cst_46 = arith.constant 9.99999997E-7 : f32
    %68 = vector.broadcast %cst_46 : f32 to vector<16x16xf32>
    %69 = arith.addf %67, %68 : vector<16x16xf32>
    %70 = math.sqrt %69 : vector<16x16xf32>
    %71 = arith.mulf %70, %60 : vector<16x16xf32>
    %72 = math.absf %71 : vector<16x16xf32>
    %cst_47 = arith.constant 1.000000e-07 : f32
    %73 = vector.broadcast %cst_47 : f32 to vector<16x16xf32>
    %74 = arith.addf %72, %73 : vector<16x16xf32>
    %75 = arith.mulf %74, %74 : vector<16x16xf32>
    %76 = vector.shape_cast %75 : vector<16x16xf32> to vector<1x16x16xf32>
    %cst_48 = arith.constant dense<0.000000e+00> : vector<1xf32>
    %77 = vector.multi_reduction <add>, %76, %cst_48 [1, 2] : vector<1x16x16xf32> to vector<1xf32>
    %78 = vector.shape_cast %77 : vector<1xf32> to vector<1x1x1xf32>
    %79 = vector.extract %78[0, 0, 0] : f32 from vector<1x1x1xf32>
    %80 = vector.broadcast %79 : f32 to vector<1x1xf32>
    %81 = arith.addf %44, %80 : vector<1x1xf32>
    %c2 = arith.constant 2 : index
    %c0_49 = arith.constant 0 : index
    %c0_50 = arith.constant 0 : index
    %82 = vector.load %arg1[%c2, %c0_49, %c0_50] : memref<4x16x16xf32, #tpu.memory_space<vmem>>, vector<1x16x16xf32>
    %83 = vector.shape_cast %82 : vector<1x16x16xf32> to vector<16x16xf32>
    %c2_51 = arith.constant 2 : index
    %c0_52 = arith.constant 0 : index
    %c0_53 = arith.constant 0 : index
    %84 = vector.load %arg2[%c2_51, %c0_52, %c0_53] : memref<4x16x16xf32, #tpu.memory_space<vmem>>, vector<1x16x16xf32>
    %85 = vector.shape_cast %84 : vector<1x16x16xf32> to vector<16x16xf32>
    %c2_54 = arith.constant 2 : index
    %c0_55 = arith.constant 0 : index
    %c0_56 = arith.constant 0 : index
    %86 = vector.load %arg3[%c2_54, %c0_55, %c0_56] : memref<4x16x16xf32, #tpu.memory_space<vmem>>, vector<1x16x16xf32>
    %87 = vector.shape_cast %86 : vector<1x16x16xf32> to vector<16x16xf32>
    %88 = arith.subf %83, %85 : vector<16x16xf32>
    %89 = arith.mulf %88, %88 : vector<16x16xf32>
    %90 = vector.shape_cast %89 : vector<16x16xf32> to vector<1x16x16xf32>
    %cst_57 = arith.constant dense<0.000000e+00> : vector<1xf32>
    %91 = vector.multi_reduction <add>, %90, %cst_57 [1, 2] : vector<1x16x16xf32> to vector<1xf32>
    %92 = vector.shape_cast %91 : vector<1xf32> to vector<1x1x1xf32>
    %93 = vector.extract %92[0, 0, 0] : f32 from vector<1x1x1xf32>
    %94 = vector.broadcast %93 : f32 to vector<1x1xf32>
    %95 = arith.addf %58, %94 : vector<1x1xf32>
    %cst_58 = arith.constant dense<0.000000e+00> : vector<16x16xf32>
    %96 = tpu.matmul %0, %87, %cst_58 {dimension_numbers = #tpu.dot_dimension_numbers<[1], [0], [0], [1], [0, 0, 1, 1], [], []>} : vector<16x16xf32>, vector<16x16xf32>, vector<16x16xf32> -> vector<16x16xf32>
    %cst_59 = arith.constant dense<0.000000e+00> : vector<16x16xf32>
    %97 = tpu.matmul %96, %1, %cst_59 {dimension_numbers = #tpu.dot_dimension_numbers<[1], [0], [0], [1], [0, 0, 1, 1], [], []>} : vector<16x16xf32>, vector<16x16xf32>, vector<16x16xf32> -> vector<16x16xf32>
    %cst_60 = arith.constant dense<0.000000e+00> : vector<16x16xf32>
    %98 = tpu.matmul %2, %83, %cst_60 {dimension_numbers = #tpu.dot_dimension_numbers<[1], [0], [0], [1], [0, 0, 1, 1], [], []>} : vector<16x16xf32>, vector<16x16xf32>, vector<16x16xf32> -> vector<16x16xf32>
    %cst_61 = arith.constant dense<0.000000e+00> : vector<16x16xf32>
    %99 = tpu.matmul %98, %3, %cst_61 {dimension_numbers = #tpu.dot_dimension_numbers<[1], [0], [0], [1], [0, 0, 1, 1], [], []>} : vector<16x16xf32>, vector<16x16xf32>, vector<16x16xf32> -> vector<16x16xf32>
    %cst_62 = arith.constant dense<0.000000e+00> : vector<16x16xf32>
    %100 = tpu.matmul %4, %83, %cst_62 {dimension_numbers = #tpu.dot_dimension_numbers<[1], [0], [0], [1], [0, 0, 1, 1], [], []>} : vector<16x16xf32>, vector<16x16xf32>, vector<16x16xf32> -> vector<16x16xf32>
    %cst_63 = arith.constant dense<0.000000e+00> : vector<16x16xf32>
    %101 = tpu.matmul %100, %5, %cst_63 {dimension_numbers = #tpu.dot_dimension_numbers<[1], [0], [0], [1], [0, 0, 1, 1], [], []>} : vector<16x16xf32>, vector<16x16xf32>, vector<16x16xf32> -> vector<16x16xf32>
    %102 = arith.mulf %99, %99 : vector<16x16xf32>
    %103 = arith.mulf %101, %101 : vector<16x16xf32>
    %104 = arith.addf %102, %103 : vector<16x16xf32>
    %cst_64 = arith.constant 9.99999997E-7 : f32
    %105 = vector.broadcast %cst_64 : f32 to vector<16x16xf32>
    %106 = arith.addf %104, %105 : vector<16x16xf32>
    %107 = math.sqrt %106 : vector<16x16xf32>
    %108 = arith.mulf %107, %97 : vector<16x16xf32>
    %109 = math.absf %108 : vector<16x16xf32>
    %cst_65 = arith.constant 1.000000e-07 : f32
    %110 = vector.broadcast %cst_65 : f32 to vector<16x16xf32>
    %111 = arith.addf %109, %110 : vector<16x16xf32>
    %112 = arith.mulf %111, %111 : vector<16x16xf32>
    %113 = vector.shape_cast %112 : vector<16x16xf32> to vector<1x16x16xf32>
    %cst_66 = arith.constant dense<0.000000e+00> : vector<1xf32>
    %114 = vector.multi_reduction <add>, %113, %cst_66 [1, 2] : vector<1x16x16xf32> to vector<1xf32>
    %115 = vector.shape_cast %114 : vector<1xf32> to vector<1x1x1xf32>
    %116 = vector.extract %115[0, 0, 0] : f32 from vector<1x1x1xf32>
    %117 = vector.broadcast %116 : f32 to vector<1x1xf32>
    %118 = arith.addf %81, %117 : vector<1x1xf32>
    %c3 = arith.constant 3 : index
    %c0_67 = arith.constant 0 : index
    %c0_68 = arith.constant 0 : index
    %119 = vector.load %arg1[%c3, %c0_67, %c0_68] : memref<4x16x16xf32, #tpu.memory_space<vmem>>, vector<1x16x16xf32>
    %120 = vector.shape_cast %119 : vector<1x16x16xf32> to vector<16x16xf32>
    %c3_69 = arith.constant 3 : index
    %c0_70 = arith.constant 0 : index
    %c0_71 = arith.constant 0 : index
    %121 = vector.load %arg2[%c3_69, %c0_70, %c0_71] : memref<4x16x16xf32, #tpu.memory_space<vmem>>, vector<1x16x16xf32>
    %122 = vector.shape_cast %121 : vector<1x16x16xf32> to vector<16x16xf32>
    %c3_72 = arith.constant 3 : index
    %c0_73 = arith.constant 0 : index
    %c0_74 = arith.constant 0 : index
    %123 = vector.load %arg3[%c3_72, %c0_73, %c0_74] : memref<4x16x16xf32, #tpu.memory_space<vmem>>, vector<1x16x16xf32>
    %124 = vector.shape_cast %123 : vector<1x16x16xf32> to vector<16x16xf32>
    %125 = arith.subf %120, %122 : vector<16x16xf32>
    %126 = arith.mulf %125, %125 : vector<16x16xf32>
    %127 = vector.shape_cast %126 : vector<16x16xf32> to vector<1x16x16xf32>
    %cst_75 = arith.constant dense<0.000000e+00> : vector<1xf32>
    %128 = vector.multi_reduction <add>, %127, %cst_75 [1, 2] : vector<1x16x16xf32> to vector<1xf32>
    %129 = vector.shape_cast %128 : vector<1xf32> to vector<1x1x1xf32>
    %130 = vector.extract %129[0, 0, 0] : f32 from vector<1x1x1xf32>
    %131 = vector.broadcast %130 : f32 to vector<1x1xf32>
    %132 = arith.addf %95, %131 : vector<1x1xf32>
    %cst_76 = arith.constant dense<0.000000e+00> : vector<16x16xf32>
    %133 = tpu.matmul %0, %124, %cst_76 {dimension_numbers = #tpu.dot_dimension_numbers<[1], [0], [0], [1], [0, 0, 1, 1], [], []>} : vector<16x16xf32>, vector<16x16xf32>, vector<16x16xf32> -> vector<16x16xf32>
    %cst_77 = arith.constant dense<0.000000e+00> : vector<16x16xf32>
    %134 = tpu.matmul %133, %1, %cst_77 {dimension_numbers = #tpu.dot_dimension_numbers<[1], [0], [0], [1], [0, 0, 1, 1], [], []>} : vector<16x16xf32>, vector<16x16xf32>, vector<16x16xf32> -> vector<16x16xf32>
    %cst_78 = arith.constant dense<0.000000e+00> : vector<16x16xf32>
    %135 = tpu.matmul %2, %120, %cst_78 {dimension_numbers = #tpu.dot_dimension_numbers<[1], [0], [0], [1], [0, 0, 1, 1], [], []>} : vector<16x16xf32>, vector<16x16xf32>, vector<16x16xf32> -> vector<16x16xf32>
    %cst_79 = arith.constant dense<0.000000e+00> : vector<16x16xf32>
    %136 = tpu.matmul %135, %3, %cst_79 {dimension_numbers = #tpu.dot_dimension_numbers<[1], [0], [0], [1], [0, 0, 1, 1], [], []>} : vector<16x16xf32>, vector<16x16xf32>, vector<16x16xf32> -> vector<16x16xf32>
    %cst_80 = arith.constant dense<0.000000e+00> : vector<16x16xf32>
    %137 = tpu.matmul %4, %120, %cst_80 {dimension_numbers = #tpu.dot_dimension_numbers<[1], [0], [0], [1], [0, 0, 1, 1], [], []>} : vector<16x16xf32>, vector<16x16xf32>, vector<16x16xf32> -> vector<16x16xf32>
    %cst_81 = arith.constant dense<0.000000e+00> : vector<16x16xf32>
    %138 = tpu.matmul %137, %5, %cst_81 {dimension_numbers = #tpu.dot_dimension_numbers<[1], [0], [0], [1], [0, 0, 1, 1], [], []>} : vector<16x16xf32>, vector<16x16xf32>, vector<16x16xf32> -> vector<16x16xf32>
    %139 = arith.mulf %136, %136 : vector<16x16xf32>
    %140 = arith.mulf %138, %138 : vector<16x16xf32>
    %141 = arith.addf %139, %140 : vector<16x16xf32>
    %cst_82 = arith.constant 9.99999997E-7 : f32
    %142 = vector.broadcast %cst_82 : f32 to vector<16x16xf32>
    %143 = arith.addf %141, %142 : vector<16x16xf32>
    %144 = math.sqrt %143 : vector<16x16xf32>
    %145 = arith.mulf %144, %134 : vector<16x16xf32>
    %146 = math.absf %145 : vector<16x16xf32>
    %cst_83 = arith.constant 1.000000e-07 : f32
    %147 = vector.broadcast %cst_83 : f32 to vector<16x16xf32>
    %148 = arith.addf %146, %147 : vector<16x16xf32>
    %149 = arith.mulf %148, %148 : vector<16x16xf32>
    %150 = vector.shape_cast %149 : vector<16x16xf32> to vector<1x16x16xf32>
    %cst_84 = arith.constant dense<0.000000e+00> : vector<1xf32>
    %151 = vector.multi_reduction <add>, %150, %cst_84 [1, 2] : vector<1x16x16xf32> to vector<1xf32>
    %152 = vector.shape_cast %151 : vector<1xf32> to vector<1x1x1xf32>
    %153 = vector.extract %152[0, 0, 0] : f32 from vector<1x1x1xf32>
    %154 = vector.broadcast %153 : f32 to vector<1x1xf32>
    %155 = arith.addf %118, %154 : vector<1x1xf32>
    %156 = vector.shape_cast %132 : vector<1x1xf32> to vector<1x1x1xf32>
    %157 = vector.shape_cast %156 : vector<1x1x1xf32> to vector<1x1x1xf32>
    %158 = vector.broadcast %157 : vector<1x1x1xf32> to vector<1x8x128xf32>
    %c0_85 = arith.constant 0 : index
    %c0_86 = arith.constant 0 : index
    %c0_87 = arith.constant 0 : index
    %159 = vector.load %arg10[%c0_85, %c0_86, %c0_87] : memref<1x8x128xf32, #tpu.memory_space<vmem>>, vector<1x8x128xf32>
    tpu.vector_store %arg10[%c0_85, %c0_86, %c0_87], %158 {strides = array<i32>} : memref<1x8x128xf32, #tpu.memory_space<vmem>>, vector<1x8x128xf32>,
    %160 = vector.shape_cast %155 : vector<1x1xf32> to vector<1x1x1xf32>
    %161 = vector.shape_cast %160 : vector<1x1x1xf32> to vector<1x1x1xf32>
    %162 = vector.broadcast %161 : vector<1x1x1xf32> to vector<1x8x128xf32>
    %c0_88 = arith.constant 0 : index
    %c0_89 = arith.constant 0 : index
    %c0_90 = arith.constant 0 : index
    %163 = vector.load %arg11[%c0_88, %c0_89, %c0_90] : memref<1x8x128xf32, #tpu.memory_space<vmem>>, vector<1x8x128xf32>
    tpu.vector_store %arg11[%c0_88, %c0_89, %c0_90], %162 {strides = array<i32>} : memref<1x8x128xf32, #tpu.memory_space<vmem>>, vector<1x8x128xf32>,
    return
  }
  func.func @transform_0(%arg0: i32) -> (i32, i32, i32) {
    %c0_i32 = arith.constant 0 : i32
    %c0_i32_0 = arith.constant 0 : i32
    %c0_i32_1 = arith.constant 0 : i32
    return %arg0, %c0_i32, %c0_i32_0 : i32, i32, i32
  }
  func.func @transform_1(%arg0: i32) -> (i32, i32, i32) {
    %c0_i32 = arith.constant 0 : i32
    %c0_i32_0 = arith.constant 0 : i32
    %c0_i32_1 = arith.constant 0 : i32
    return %arg0, %c0_i32, %c0_i32_0 : i32, i32, i32
  }
  func.func @transform_2(%arg0: i32) -> (i32, i32, i32) {
    %c0_i32 = arith.constant 0 : i32
    %c0_i32_0 = arith.constant 0 : i32
    %c0_i32_1 = arith.constant 0 : i32
    return %arg0, %c0_i32, %c0_i32_0 : i32, i32, i32
  }
  func.func @transform_3(%arg0: i32) -> (i32, i32) {
    %c0_i32 = arith.constant 0 : i32
    %c0_i32_0 = arith.constant 0 : i32
    %c0_i32_1 = arith.constant 0 : i32
    return %c0_i32, %c0_i32_0 : i32, i32
  }
  func.func @transform_4(%arg0: i32) -> (i32, i32) {
    %c0_i32 = arith.constant 0 : i32
    %c0_i32_0 = arith.constant 0 : i32
    %c0_i32_1 = arith.constant 0 : i32
    return %c0_i32, %c0_i32_0 : i32, i32
  }
  func.func @transform_5(%arg0: i32) -> (i32, i32) {
    %c0_i32 = arith.constant 0 : i32
    %c0_i32_0 = arith.constant 0 : i32
    %c0_i32_1 = arith.constant 0 : i32
    return %c0_i32, %c0_i32_0 : i32, i32
  }
  func.func @transform_6(%arg0: i32) -> (i32, i32) {
    %c0_i32 = arith.constant 0 : i32
    %c0_i32_0 = arith.constant 0 : i32
    %c0_i32_1 = arith.constant 0 : i32
    return %c0_i32, %c0_i32_0 : i32, i32
  }
  func.func @transform_7(%arg0: i32) -> (i32, i32) {
    %c0_i32 = arith.constant 0 : i32
    %c0_i32_0 = arith.constant 0 : i32
    %c0_i32_1 = arith.constant 0 : i32
    return %c0_i32, %c0_i32_0 : i32, i32
  }
  func.func @transform_8(%arg0: i32) -> (i32, i32) {
    %c0_i32 = arith.constant 0 : i32
    %c0_i32_0 = arith.constant 0 : i32
    %c0_i32_1 = arith.constant 0 : i32
    return %c0_i32, %c0_i32_0 : i32, i32
  }
  func.func @transform_9(%arg0: i32) -> (i32, i32, i32) {
    %c0_i32 = arith.constant 0 : i32
    %c0_i32_0 = arith.constant 0 : i32
    %c0_i32_1 = arith.constant 0 : i32
    return %arg0, %c0_i32, %c0_i32_0 : i32, i32, i32
  }
  func.func @transform_10(%arg0: i32) -> (i32, i32, i32) {
    %c0_i32 = arith.constant 0 : i32
    %c0_i32_0 = arith.constant 0 : i32
    %c0_i32_1 = arith.constant 0 : i32
    return %arg0, %c0_i32, %c0_i32_0 : i32, i32, i32
  }
}

</mosaic_0001>

<bundles_post_ra>
// kernel: tpu_custom_call.1
= control target key start
LH: loop header
LB: loop body
LE: loop exit
PB: predicated region body
PF: predicated region fallthrough
CT: control target
= control target key end

     0   :  { %s4658_s0 = inlined_call_operand.hbm [shape: f32[8,16,16], index: 0, kind: input, shape index: {}]   ;;  %s4659_s1 = inlined_call_operand.hbm [shape: f32[8,16,16], index: 1, kind: input, shape index: {}]   ;;  %s4660_s2 = inlined_call_operand.hbm [shape: f32[8,16,16], index: 2, kind: input, shape index: {}]   ;;  %s4661_s3 = inlined_call_operand.hbm [shape: f32[16,16], index: 3, kind: input, shape index: {}]   ;;  %s4662_s4 = inlined_call_operand.hbm [shape: f32[16,16], index: 4, kind: input, shape index: {}]   ;;  %s4663_s5 = inlined_call_operand.vmem [shape: f32[16,16], index: 5, kind: input, shape index: {}]   ;;  %s4664_s6 = inlined_call_operand.hbm [shape: f32[16,16], index: 6, kind: input, shape index: {}]   ;;  %s4665_s7 = inlined_call_operand.hbm [shape: f32[16,16], index: 7, kind: input, shape index: {}]   ;;  %s4666_s8 = inlined_call_operand.hbm [shape: f32[16,16], index: 8, kind: input, shape index: {}]   ;;  %s4667_s9 = inlined_call_operand.hbm [shape: f32[2,8,128], index: 9, kind: output, shape index: {0}]   ;;  %s4668_s10 = inlined_call_operand.hbm [shape: f32[2,8,128], index: 10, kind: output, shape index: {1}]  }
   0x1   :  { %4698 = sst [smem:[#allocation33_spill]] %s4659_s1 }
   0x2   :  { %4699 = sst [smem:[#allocation34_spill]] %s4661_s3 }
   0x3   :  { %4700 = sst [smem:[#allocation35_spill]] %s4663_s5 }
   0x4   :  { %4701 = sst [smem:[#allocation36_spill]] %s4664_s6 }
   0x5   :  { %4702 = sst [smem:[#allocation37_spill]] %s4667_s9 }
   0x6   :  { %4703 = sst [smem:[#allocation38_spill]] %s4668_s10 }
   0x7   :  { %16 = vsyncpa [#allocation3], 0 }
   0x8   :  { %18 = vsyncpa [#allocation3 + $0x1], 0 }
   0x9   :  { %19 = vsyncpa [#allocation6], 0 }
   0xa   :  { %21 = vsyncpa [#allocation6 + $0x1], 0 }
   0xb   :  { %22 = vsyncpa [#allocation9], 0 }
   0xc   :  { %23 = vsyncpa [#allocation12], 0 }
   0xd   :  { %24 = vsyncpa [#allocation15], 0 }
   0xe   :  { %25 = vsyncpa [#allocation4], 0 }
   0xf   :  { %27 = vsyncpa [#allocation4 + $0x1], 0 }
  0x10   :  { %28 = vsyncpa [#allocation18], 0 }
  0x11   :  { %30 = vsyncpa [#allocation18 + $0x1], 0  ;;  %s3984_s13 = smov 0   ;;  %s3986_s14 = smov 0  }
  0x12   :  { %s3988_s15 = smov 0   ;;  %s3990_s16 = smov 0  }
  0x13 LB: > { %4704 = sst [smem:[#allocation26_spill]] %s3903_s13  ;;  %s3917_s17 = smov [#allocation8]   ;;  %s3915_s16 = sphi %s3990_s16, %s4749_s16   ;;  %s3911_s15 = sphi %s3988_s15, %s4753_s15   ;;  %s3907_s14 = sphi %s3986_s14, %s4752_s14   ;;  %s3903_s13 = sphi %s3984_s13, %s4751_s13  }
  0x14   : > { %4705 = sst [smem:[#allocation27_spill]] %s3915_s16  ;;  %s309_s18 = sshll.u32 %s3917_s17, 4  ;;  %s4011_s18 = int_to_ptr.vmem [resolvable:$true] %s309_s18 }
  0x15   : > { %s4005_s19 = sadd.s32 4294967295, %s3915_s16   ;;  %p2957_p0 = scmp.ge.s32.totalorder %s3915_s16, 1 }
  0x16   : > { %4706 = sst [smem:[#allocation28_spill]] %s4005_s19  ;;  %p4669_p1 = scmp.eq.s32.totalorder %s4005_s19, 0 }
  0x17   : > { %p258_p2 = scmp.eq.s32.totalorder %s4005_s19, 1  ;;  %p297_p3 = scmp.lt.s32.totalorder %s3915_s16, 3 }
  0x18   : > { %s3918_s21 = smov [#allocation11]   ;;  %s4709_s3 = sld [smem:[#allocation34_spill]] }
  0x19   : > { %p4013_p4 = pnand %p2957_p0, %p297_p3  ;;  %s338_s22 = sshll.u32 %s3918_s21, 4  ;;  %s4020_s22 = int_to_ptr.vmem [resolvable:$true] %s338_s22 }
  0x1b   : > { %s4707_s20 = scalar_select %p4013_p4, 1, 0 }
  0x1c   : > { %p3471_p6 = pneg %p4013_p4 }
  0x1e   : > { %p4024_p7 = pnand %p3471_p6, %p4669_p1  ;;  %s3571_s26 = scalar_lea.hbm %s4709_s3, 256 }
  0x1f   : > { %p3572_p8 = scmp.ne.s32.totalorder %s4709_s3, %s3571_s26  ;;  %p3578_p12 = scmp.lt.u32.totalorder %s3571_s26, %s4709_s3 }
  0x20   : > { %s4708_s23 = scalar_select %p4024_p7, 1, 0 }
  0x21   : > { %p4036_p9 = pneg %p4024_p7 }
  0x23   : > { %s4710_s29 = scalar_select %p4036_p9, 1, 0 }
  0x24   : > { %p3574_p10 = pnand %p4036_p9, %p3572_p8 }
  0x26   : > { %p3575_p11 = pneg %p3574_p10 }
  0x28   : > { %p3580_p13 = pnand %p3578_p12, %p3575_p11 }
  0x2a   : > { %3583 = shalt.err (!%p3580_p13)
}
  0x2b   : > { %s3584_s12 = scalar_lea.vmem %s4011_s18, 256  ;;  %p3592_p5 = scmp.lt.s32.totalorder %s4011_s18, %s4011_s18 }
  0x2c   : > { %p3585_p0 = scmp.ne.s32.totalorder %s4011_s18, %s3584_s12  ;;  %p3593_p1 = scmp.lt.s32.totalorder %s3584_s12, %s3584_s12 }
  0x2e   : > { %p3587_p3 = pnand %p3585_p0, %p4036_p9  ;;  %p3594_p8 = por %p3593_p1, %p3592_p5 }
  0x30   : > { %p3588_p6 = pneg %p3587_p3 }
  0x32   : > { %p3595_p10 = pnand %p3594_p8, %p3588_p6 }
  0x34   : > { %3598 = shalt.err (!%p3595_p10)
}
  0x35   : > { %s4672_s17 = smov 128   ;;  %s4674_s21 = smov 8  }
  0x36   : > { %3474 = dma.hbm_to_vmem [thread:$0]  (!%p4024_p7), %s4709_s3, 256, %s4011_s18, [#allocation9], %s4672_s17, %s4672_s17, %s4674_s21  }
  0x37   : > { %s4711_s6 = sld [smem:[#allocation36_spill]] }
  0x3d   : > { %s3599_s28 = scalar_lea.hbm %s4711_s6, 256 }
  0x3e   : > { %p3600_p1 = scmp.ne.s32.totalorder %s4711_s6, %s3599_s28  ;;  %p3606_p12 = scmp.lt.u32.totalorder %s3599_s28, %s4711_s6 }
  0x40   : > { %p3602_p5 = pnand %p3600_p1, %p4036_p9 }
  0x42   : > { %p3603_p11 = pneg %p3602_p5 }
  0x44   : > { %p3608_p13 = pnand %p3606_p12, %p3603_p11 }
  0x46   : > { %3611 = shalt.err (!%p3608_p13)
}
  0x47   : > { %s3612_s18 = scalar_lea.vmem %s4020_s22, 256  ;;  %p3620_p8 = scmp.lt.s32.totalorder %s4020_s22, %s4020_s22 }
  0x48   : > { %p3613_p0 = scmp.ne.s32.totalorder %s4020_s22, %s3612_s18  ;;  %p3621_p10 = scmp.lt.s32.totalorder %s3612_s18, %s3612_s18 }
  0x4a   : > { %p3615_p3 = pnand %p3613_p0, %p4036_p9  ;;  %p3622_p1 = por %p3621_p10, %p3620_p8 }
  0x4c   : > { %p3616_p6 = pneg %p3615_p3 }
  0x4e   : > { %p3623_p5 = pnand %p3622_p1, %p3616_p6 }
  0x50   : > { %3626 = shalt.err (!%p3623_p5)
}
  0x51   : > { %3480 = dma.hbm_to_vmem [thread:$0]  (!%p4024_p7), %s4711_s6, 256, %s4020_s22, [#allocation12], %s4672_s17, %s4672_s17, %s4674_s21  }
  0x52   : > { %s2956_s25 = sadd.s32 4294967294, %s3915_s16   ;;  %s4088_s26 = sadd.s32 1, %s3915_s16  }
  0x53   : > { %4712 = sst [smem:[#allocation29_spill]] %s4088_s26  ;;  %s43_s27 = sadd.s32 1, %s3911_s15 }
  0x54   : > { %s40_s28 = ssub.s32 %s3915_s16, %s4088_s26  ;;  %p50_p11 = scmp.ne.s32.totalorder %s3911_s15, %s3907_s14 }
  0x55   : > { %p41_p12 = scmp.eq.s32.totalorder %s40_s28, 0  ;;  %p51_p13 = scmp.eq.s32.totalorder %s3915_s16, 0 }
  0x56   : > { %p56_p0 = scmp.ne.s32.totalorder %s3907_s14, %s3903_s13  ;;  %p4100_p3 = por %p258_p2, %p50_p11 }
  0x57   : > { %s4105_s11 = scalar_select %p41_p12, %s3911_s15, %s43_s27  }
  0x58   : > { %s4713_s30 = scalar_select %p4100_p3, 1, 0 }
  0x59   : > { %4715 = sst [smem:[#allocation31_spill]] %s4105_s11  ;;  %p52_p6 = por %p51_p13, %p50_p11 }
  0x5a   : > { %4714 = sst [smem:[#allocation30_spill]] %s4713_s30  ;;  %p4716_p8 = scmp.eq.s32.totalorder %s4005_s19, 0 }
  0x5b   : > { %p264_p1 = scmp.eq.s32.totalorder %s2956_s25, 1  ;;  %p3509_p5 = scmp.lt.s32.totalorder %s3915_s16, 2 }
  0x5c   : > { %p4109_p10 = por %p4716_p8, %p56_p0  ;;  %s4676_s12 = sand.u32 1, %s3911_s15  }
  0x5d   : > { %s4116_s18 = sshll.u32 %s3915_s16, 10  ;;  %p4118_p4 = por %p264_p1, %p56_p0 }
  0x5e   : > { %s4717_s22 = scalar_select %p4109_p10, 1, 0 }
  0x5f   : > { %s4718_s10 = scalar_select %p4118_p4, 1, 0 }
  0x60   : > { %s4124_s24 = sshll.u32 %s4676_s12, 6  ;;  %p4126_p2 = pnand %p3509_p5, %p52_p6 }
  0x61   : > { %4719 = sst [smem:[#allocation32_spill]] %s4718_s10  ;;  %s400_s28 = sand.u32 1, %s3915_s16  }
  0x62   : > { %s4720_s27 = scalar_select %p4126_p2, 1, 0 }
  0x63   : > { %s4721_s1 = sld [smem:[#allocation33_spill]]  ;;  %s404_s3 = scalar_lea.vmem [#allocation5], %s4124_s24 }
  0x64   : > { %s412_s6 = sshll.u32 %s404_s3, 4  ;;  %s3921_s12 = smov [#allocation10]   ;;  %s4138_s6 = int_to_ptr.vmem [resolvable:$true] %s412_s6 }
  0x65   : > { %s4140_s11 = sshll.u32 %s3921_s12, 4  ;;  %s4142_s26 = scalar_lea.sflag [#allocation6], %s400_s28  ;;  %s323_s11 = int_to_ptr.vmem [resolvable:$true] %s4140_s11 }
  0x66   : > { %p4148_p12 = pneg %p4126_p2 }
  0x68   : > { %s4722_s17 = scalar_select %p4148_p12, 1, 0 }
  0x69   : > { %s4135_s21 = scalar_lea.hbm %s4721_s1, %s4116_s18  ;;  %s3632_s16 = scalar_lea.hbm %s4721_s1, 2048 }
  0x6a   : > { %s3627_s10 = scalar_lea.hbm %s4135_s21, 1024  ;;  %p3633_p6 = scmp.lt.u32.totalorder %s4135_s21, %s4721_s1 }
  0x6b   : > { %p3628_p11 = scmp.ne.s32.totalorder %s4135_s21, %s3627_s10  ;;  %p3634_p8 = scmp.lt.u32.totalorder %s3632_s16, %s3627_s10 }
  0x6c   : > { %p3636_p5 = scmp.lt.u32.totalorder %s3627_s10, %s4135_s21 }
  0x6d   : > { %p3630_p13 = pnand %p4148_p12, %p3628_p11  ;;  %p3635_p1 = por %p3634_p8, %p3633_p6 }
  0x6f   : > { %p3631_p0 = pneg %p3630_p13  ;;  %p3637_p4 = por %p3636_p5, %p3635_p1 }
  0x71   : > { %p3638_p3 = pnand %p3637_p4, %p3631_p0 }
  0x73   : > { %3641 = shalt.err (!%p3638_p3)
}
  0x74   : > { %s3642_s28 = scalar_lea.vmem %s4138_s6, 1024  ;;  %s3922_s25 = smov [#allocation5]  }
  0x75   : > { %p3643_p11 = scmp.ne.s32.totalorder %s4138_s6, %s3642_s28  ;;  %s3647_s3 = sshll.u32 %s3922_s25, 4  ;;  %s3648_s3 = int_to_ptr.vmem [resolvable:$false] %s3647_s3 }
  0x76   : > { %s3649_s13 = scalar_lea.vmem %s3648_s3, 2048  ;;  %p3650_p7 = scmp.lt.s32.totalorder %s4138_s6, %s3648_s3 }
  0x77   : > { %p3645_p13 = pnand %p3643_p11, %p4148_p12  ;;  %p3651_p9 = scmp.lt.s32.totalorder %s3649_s13, %s3642_s28 }
  0x79   : > { %p3646_p10 = pneg %p3645_p13  ;;  %p3652_p6 = por %p3651_p9, %p3650_p7 }
  0x7b   : > { %p3653_p8 = pnand %p3652_p6, %p3646_p10 }
  0x7d   : > { %3656 = shalt.err (!%p3653_p8)
}
  0x7e   : > { %s4723_s16 = smov 8   ;;  %s4724_s10 = smov 128  }
  0x7f   : > { %3493 = dma.hbm_to_vmem [thread:$0]  (!%p4126_p2), %s4135_s21, 1024, %s4138_s6, %s4142_s26, %s4724_s10, %s4724_s10, %s4723_s16  }
  0x80   : > { %s3657_s3 = scalar_lea.hbm %s4662_s4, 256  ;;  %p4725_p7 = scmp.ne.s32.totalorder %s4710_s29, 0 }
  0x81   : > { %p3658_p4 = scmp.ne.s32.totalorder %s4662_s4, %s3657_s3  ;;  %p3664_p10 = scmp.lt.u32.totalorder %s3657_s3, %s4662_s4 }
  0x83   : > { %p3660_p9 = pnand %p3658_p4, %p4725_p7 }
  0x85   : > { %p3661_p3 = pneg %p3660_p9 }
  0x87   : > { %p3666_p0 = pnand %p3664_p10, %p3661_p3 }
  0x89   : > { %3669 = shalt.err (!%p3666_p0)
}
  0x8a   : > { %s3670_s30 = scalar_lea.vmem %s323_s11, 256  ;;  %p3678_p13 = scmp.lt.s32.totalorder %s323_s11, %s323_s11 }
  0x8b   : > { %p3671_p1 = scmp.ne.s32.totalorder %s323_s11, %s3670_s30  ;;  %p3679_p6 = scmp.lt.s32.totalorder %s3670_s30, %s3670_s30 }
  0x8d   : > { %p3673_p5 = pnand %p3671_p1, %p4725_p7  ;;  %p3680_p8 = por %p3679_p6, %p3678_p13 }
  0x8f   : > { %p3674_p11 = pneg %p3673_p5 }
  0x91   : > { %p3681_p2 = pnand %p3680_p8, %p3674_p11 }
  0x93   : > { %3684 = shalt.err (!%p3681_p2)
}
  0x94   : > { %p4726_p4 = scmp.ne.s32.totalorder %s4708_s23, 0  ;;  %s3923_s9 = smov [#allocation13]  }
  0x95   : > { %s351_s21 = sshll.u32 %s3923_s9, 4  ;;  %s3924_s12 = smov [#allocation14]   ;;  %s352_s21 = int_to_ptr.vmem [resolvable:$true] %s351_s21 }
  0x96   : > { %3477 = dma.hbm_to_vmem [thread:$0]  (!%p4726_p4), %s4662_s4, 256, %s323_s11, [#allocation9], %s4724_s10, %s4724_s10, %s4723_s16  }
  0x97   : > { %s364_s25 = sshll.u32 %s3924_s12, 4  ;;  %s3685_s28 = scalar_lea.hbm %s4665_s7, 256  ;;  %s365_s25 = int_to_ptr.vmem [resolvable:$true] %s364_s25 }
  0x98   : > { %p3686_p2 = scmp.ne.s32.totalorder %s4665_s7, %s3685_s28  ;;  %p3692_p10 = scmp.lt.u32.totalorder %s3685_s28, %s4665_s7 }
  0x9a   : > { %p3688_p9 = pnand %p3686_p2, %p4725_p7 }
  0x9c   : > { %p3689_p3 = pneg %p3688_p9 }
  0x9e   : > { %p3694_p0 = pnand %p3692_p10, %p3689_p3 }
  0xa0   : > { %3697 = shalt.err (!%p3694_p0)
}
  0xa1   : > { %s3698_s11 = scalar_lea.vmem %s352_s21, 256  ;;  %p3706_p13 = scmp.lt.s32.totalorder %s352_s21, %s352_s21 }
  0xa2   : > { %p3699_p1 = scmp.ne.s32.totalorder %s352_s21, %s3698_s11  ;;  %p3707_p6 = scmp.lt.s32.totalorder %s3698_s11, %s3698_s11 }
  0xa4   : > { %p3701_p5 = pnand %p3699_p1, %p4725_p7  ;;  %p3708_p8 = por %p3707_p6, %p3706_p13 }
  0xa6   : > { %p3702_p11 = pneg %p3701_p5 }
  0xa8   : > { %p3709_p12 = pnand %p3708_p8, %p3702_p11 }
  0xaa   : > { %3712 = shalt.err (!%p3709_p12)
}
  0xab   : > { %3483 = dma.hbm_to_vmem [thread:$0]  (!%p4726_p4), %s4665_s7, 256, %s352_s21, [#allocation12], %s4724_s10, %s4724_s10, %s4723_s16  }
  0xac   : > { %s3713_s12 = scalar_lea.hbm %s4666_s8, 256 }
  0xad   : > { %p3714_p2 = scmp.ne.s32.totalorder %s4666_s8, %s3713_s12  ;;  %p3720_p3 = scmp.lt.u32.totalorder %s3713_s12, %s4666_s8 }
  0xaf   : > { %p3716_p12 = pnand %p3714_p2, %p4725_p7 }
  0xb1   : > { %p3717_p9 = pneg %p3716_p12 }
  0xb3   : > { %p3722_p10 = pnand %p3720_p3, %p3717_p9 }
  0xb5   : > { %3725 = shalt.err (!%p3722_p10)
}
  0xb6   : > { %s3726_s1 = scalar_lea.vmem %s365_s25, 256  ;;  %p3734_p11 = scmp.lt.s32.totalorder %s365_s25, %s365_s25 }
  0xb7   : > { %p3727_p0 = scmp.ne.s32.totalorder %s365_s25, %s3726_s1  ;;  %p3735_p13 = scmp.lt.s32.totalorder %s3726_s1, %s3726_s1 }
  0xb9   : > { %p3729_p1 = pnand %p3727_p0, %p4725_p7  ;;  %p3736_p6 = por %p3735_p13, %p3734_p11 }
  0xbb   : > { %p3730_p5 = pneg %p3729_p1 }
  0xbd   : > { %p3737_p8 = pnand %p3736_p6, %p3730_p5 }
  0xbf   : > { %3740 = shalt.err (!%p3737_p8)
}
  0xc0   : > { %3486 = dma.hbm_to_vmem [thread:$0]  (!%p4726_p4), %s4666_s8, 256, %s365_s25, [#allocation15], %s4724_s10, %s4724_s10, %s4723_s16  }
  0xc1   : > { %s4243_s19 = scalar_lea.hbm %s4658_s0, %s4116_s18  ;;  %s382_s23 = scalar_lea.vmem [#allocation2], %s4124_s24 }
  0xc2   : > { %s390_s6 = sshll.u32 %s382_s23, 4  ;;  %s4252_s3 = scalar_lea.hbm %s4660_s2, %s4116_s18  ;;  %s4246_s6 = int_to_ptr.vmem [resolvable:$true] %s390_s6 }
  0xc3   : > { %s4727_s30 = sand.u32 1, %s3911_s15   ;;  %s3741_s28 = scalar_lea.hbm %s4243_s19, 1024 }
  0xc4   : > { %s4256_s25 = scalar_lea.sflag [#allocation3], %s4727_s30  ;;  %p3742_p7 = scmp.ne.s32.totalorder %s4243_s19, %s3741_s28 }
  0xc5   : > { %p4728_p4 = scmp.ne.s32.totalorder %s4722_s17, 0  ;;  %s3746_s21 = scalar_lea.hbm %s4658_s0, 2048 }
  0xc6   : > { %p3747_p9 = scmp.lt.u32.totalorder %s4243_s19, %s4658_s0  ;;  %p3748_p3 = scmp.lt.u32.totalorder %s3746_s21, %s3741_s28 }
  0xc7   : > { %p3744_p2 = pnand %p3742_p7, %p4728_p4  ;;  %p3750_p0 = scmp.lt.u32.totalorder %s3741_s28, %s4243_s19 }
  0xc8   : > { %p3749_p10 = por %p3748_p3, %p3747_p9 }
  0xc9   : > { %p3745_p12 = pneg %p3744_p2 }
  0xca   : > { %p3751_p1 = por %p3750_p0, %p3749_p10 }
  0xcc   : > { %p3752_p5 = pnand %p3751_p1, %p3745_p12 }
  0xce   : > { %3755 = shalt.err (!%p3752_p5)
}
  0xcf   : > { %s3756_s18 = scalar_lea.vmem %s4246_s6, 1024  ;;  %s3925_s5 = smov [#allocation2]  }
  0xd0   : > { %p3757_p11 = scmp.ne.s32.totalorder %s4246_s6, %s3756_s18  ;;  %s3761_s23 = sshll.u32 %s3925_s5, 4  ;;  %s3762_s23 = int_to_ptr.vmem [resolvable:$false] %s3761_s23 }
  0xd1   : > { %s3763_s9 = scalar_lea.vmem %s3762_s23, 2048  ;;  %p3764_p8 = scmp.lt.s32.totalorder %s4246_s6, %s3762_s23 }
  0xd2   : > { %p3759_p13 = pnand %p3757_p11, %p4728_p4  ;;  %p3765_p7 = scmp.lt.s32.totalorder %s3763_s9, %s3756_s18 }
  0xd4   : > { %p3760_p6 = pneg %p3759_p13  ;;  %p3766_p2 = por %p3765_p7, %p3764_p8 }
  0xd6   : > { %p3767_p9 = pnand %p3766_p2, %p3760_p6 }
  0xd8   : > { %3770 = shalt.err (!%p3767_p9)
}
  0xd9   : > { %p4729_p12 = scmp.ne.s32.totalorder %s4720_s27, 0  ;;  %s426_s12 = scalar_lea.vmem [#allocation7], %s4124_s24 }
  0xda   : > { %s434_s30 = sshll.u32 %s426_s12, 4  ;;  %s3771_s28 = scalar_lea.hbm %s4252_s3, 1024  ;;  %s4284_s30 = int_to_ptr.vmem [resolvable:$true] %s434_s30 }
  0xdb   : > { %3490 = dma.hbm_to_vmem [thread:$0]  (!%p4729_p12), %s4243_s19, 1024, %s4246_s6, %s4256_s25, %s4724_s10, %s4724_s10, %s4723_s16  }
  0xdc   : > { %p3772_p3 = scmp.ne.s32.totalorder %s4252_s3, %s3771_s28  ;;  %s3776_s21 = scalar_lea.hbm %s4660_s2, 2048 }
  0xdd   : > { %p3777_p1 = scmp.lt.u32.totalorder %s4252_s3, %s4660_s2  ;;  %p3778_p5 = scmp.lt.u32.totalorder %s3776_s21, %s3771_s28 }
  0xde   : > { %p3774_p10 = pnand %p3772_p3, %p4728_p4  ;;  %p3780_p13 = scmp.lt.u32.totalorder %s3771_s28, %s4252_s3 }
  0xdf   : > { %p3779_p11 = por %p3778_p5, %p3777_p1 }
  0xe0   : > { %p3775_p0 = pneg %p3774_p10 }
  0xe1   : > { %p3781_p6 = por %p3780_p13, %p3779_p11 }
  0xe3   : > { %p3782_p8 = pnand %p3781_p6, %p3775_p0 }
  0xe5   : > { %3785 = shalt.err (!%p3782_p8)
}
  0xe6   : > { %s3786_s24 = scalar_lea.vmem %s4284_s30, 1024  ;;  %s3926_s19 = smov [#allocation7]  }
  0xe7   : > { %p3787_p7 = scmp.ne.s32.totalorder %s4284_s30, %s3786_s24  ;;  %s3791_s6 = sshll.u32 %s3926_s19, 4  ;;  %s3792_s6 = int_to_ptr.vmem [resolvable:$false] %s3791_s6 }
  0xe8   : > { %s3793_s25 = scalar_lea.vmem %s3792_s6, 2048  ;;  %p3794_p3 = scmp.lt.s32.totalorder %s4284_s30, %s3792_s6 }
  0xe9   : > { %p3789_p2 = pnand %p3787_p7, %p4728_p4  ;;  %p3795_p10 = scmp.lt.s32.totalorder %s3793_s25, %s3786_s24 }
  0xeb   : > { %p3790_p9 = pneg %p3789_p2  ;;  %p3796_p1 = por %p3795_p10, %p3794_p3 }
  0xed   : > { %p3797_p5 = pnand %p3796_p1, %p3790_p9 }
  0xef   : > { %3800 = shalt.err (!%p3797_p5)
}
  0xf0   : > { %3496 = dma.hbm_to_vmem [thread:$0]  (!%p4729_p12), %s4252_s3, 1024, %s4284_s30, %s4142_s26, %s4724_s10, %s4724_s10, %s4723_s16  }
  0xf1   : > { %p4730_p4 = scmp.ne.s32.totalorder %s4707_s20, 0 }
  0xf2   : > { %s4314_s17 = sand.u32 (!%p4730_p4), 1, %s3907_s14   ;;  %p4731_p0 = scmp.ne.s32.totalorder (!%p4730_p4), %s4717_s22, 0 }
  0xf3   : > { %446 = sbr.rel (%p4730_p4) target bundleno = 1015 (0x3f7), region = 56  ;;  %s2977_s18 = sshll.u32 (!%p4730_p4), %s4314_s17, 6 }
  0xf4   : > { %s449_s5 = scalar_lea.sflag (!%p4730_p4), [#allocation3], %s4314_s17  ;;  %s4318_s23 = scalar_lea.vmem (!%p4730_p4), [#allocation2], %s2977_s18 }
  0xfa   : > { %3874 = dma.done.wait (%p4731_p0), %s449_s5, 1024  }
  0xfb   : > { %3876 = vsyncadd (%p4731_p0), %s449_s5, 4294966272  ;;  %s4732_s27 = sld [smem:[#allocation28_spill]]  ;;  %s4325_s16 = scalar_lea.vmem [#allocation5], %s2977_s18 }
 0x101   : > { %s457_s26 = sand.u32 1, %s4732_s27  }
 0x102   : > { %s458_s20 = scalar_lea.sflag [#allocation6], %s457_s26 }
 0x103   : > { %3878 = dma.done.wait (%p4731_p0), %s458_s20, 2048  }
 0x104   : > { %3880 = vsyncadd (%p4731_p0), %s458_s20, 4294965248  ;;  %s4331_s10 = scalar_lea.vmem [#allocation7], %s2977_s18  ;;  %p4733_p12 = scmp.eq.s32.totalorder %s4732_s27, 0 }
 0x106   : > { %3882 = dma.done.wait (%p4733_p12), [#allocation9], 512   ;;  %p4734_p11 = pmov %p4733_p12 }
 0x108   : > { %3884 = vsyncadd (%p4734_p11), [#allocation9], 4294966784  ;;  %p4735_p13 = pmov %p4734_p11 }
 0x109   : > { %p4736_p6 = pmov %p4734_p11 }
 0x10a   : > { %3886 = dma.done.wait (%p4735_p13), [#allocation12], 512  }
 0x10b   : > { %3888 = vsyncadd (%p4736_p6), [#allocation12], 4294966784  ;;  %p4737_p8 = pmov %p4736_p6 }
 0x10c   : > { %p4738_p7 = pmov %p4736_p6 }
 0x10d   : > { %3890 = dma.done.wait (%p4737_p8), [#allocation15], 256  }
 0x10e   : > { %3892 = vsyncadd (%p4738_p7), [#allocation15], 4294967040  ;;  %vm567_vm0 = vcmask 130048   ;;  %v561_v0 = vld [vmem:[%s4331_s10] sm:$0xff]  ;;  %v562_v1 = vld [vmem:[%s4331_s10 + $0x8] sm:$0xff]  ;;  %s4739_s9 = sld [smem:[#allocation35_spill]] }
 0x10f   : > { %v4347_v2 = vld [vmem:[#allocation8] sm:$0xff]  ;;  %v3329_v3 = vpack.c.bf16 %v562_v1, %v561_v0  ;;  %v4355_v5 = vld [vmem:[%s4318_s23 + $0x8] sm:$0xff]  ;;  %v3003_v9 = vld [vmem:[%s4331_s10 + $0x10] sm:$0xff]  ;;  %s2985_s29 = sshll.u32 %s4314_s17, 3  ;;  %s4740_s24 = sld [smem:[#allocation30_spill]] }
 0x110   : > { %3165 = vmatprep.mubr.msk.f32.mxu0 %vm567_vm0, %v4347_v2  ;;  %v4352_v4 = vld [vmem:[%s4318_s23] sm:$0xff]  ;;  %v4359_v7 = vld [vmem:[#allocation8 + $0x8] sm:$0xff]  ;;  %v3004_v10 = vld [vmem:[%s4331_s10 + $0x18] sm:$0xff]  ;;  %s3055_s19 = sshll.u32 %s4732_s27, 7  ;;  %s534_s25 = scalar_lea.vmem [#allocation16], %s2985_s29 }
 0x111   : > { %v3337_v6 = vpack.c.bf16 %v4355_v5, %v4352_v4  ;;  %3330 = vmatprep.subr.bf16.mxu0 %v3329_v3  ;;  %v547_v11 = vld [vmem:[#allocation10] sm:$0xff]  ;;  %v548_v12 = vld [vmem:[#allocation10 + $0x8] sm:$0xff]  ;;  %v3353_v16 = vpack.c.bf16 %v3004_v10, %v3003_v9  ;;  %v3021_v21 = vld [vmem:[%s4331_s10 + $0x20] sm:$0xff]  ;;  %s2750_s18 = sshll.u32 %s534_s25, 4  ;;  %s4741_s20 = sld [smem:[#allocation37_spill]]  ;;  %s4580_s18 = int_to_ptr.vmem [resolvable:$true] %s2750_s18 }
 0x112   : > { %3332 = vmatpush3.bf16.msra.mxu0 %v3329_v3  ;;  %v4375_v14 = vpack.c.bf16 %v548_v12, %v547_v11  ;;  %v553_v15 = vld [vmem:[#allocation13] sm:$0xff]  ;;  %v4381_v18 = vld [vmem:[%s4318_s23 + $0x18] sm:$0xff]  ;;  %v3022_v22 = vld [vmem:[%s4331_s10 + $0x28] sm:$0xff]  ;;  %s3801_s22 = scalar_lea.vmem %s4580_s18, 128  ;;  %s3927_s3 = smov [#allocation16]  }
 0x113   : > { %3338 = vmatprep.subr.bf16.mxu0 %v3337_v6  ;;  %v4378_v17 = vld [vmem:[%s4318_s23 + $0x10] sm:$0xff]  ;;  %v554_v19 = vld [vmem:[#allocation13 + $0x8] sm:$0xff]  ;;  %v3377_v23 = vpack.c.bf16 %v3022_v22, %v3021_v21  ;;  %v4399_v24 = vld [vmem:[%s4318_s23 + $0x20] sm:$0xff]  ;;  %p3802_p2 = scmp.ne.s32.totalorder %s4580_s18, %s3801_s22  ;;  %s3805_s12 = sshll.u32 %s3927_s3, 4  ;;  %s3806_s12 = int_to_ptr.vmem [resolvable:$false] %s3805_s12 }
 0x114   : > { %v4364_v8 = vld [vmem:[%s4739_s9] sm:$0xff]  ;;  %v550_v13 = vld [vmem:[%s4739_s9 + $0x8] sm:$0xff]  ;;  %3334 = vmatprep.subr.bf16.mxu1 %v4375_v14  ;;  %v3361_v20 = vpack.c.bf16 %v4381_v18, %v4378_v17  ;;  %v3039_v27 = vld [vmem:[%s4331_s10 + $0x30] sm:$0xff]  ;;  %s3807_s30 = scalar_lea.vmem %s3806_s12, 256  ;;  %p3808_p1 = scmp.lt.s32.totalorder %s4580_s18, %s3806_s12 }
 0x115   : > { %3166 = vmatmul.mubr.msk.f32.vlgmr.msra.gmra.mrb[0].mxu0 %vm567_vm0, %v4359_v7  ;;  %3336 = vmatpush3.bf16.msra.mxu1 %v4375_v14  ;;  %v4402_v25 = vld [vmem:[%s4318_s23 + $0x28] sm:$0xff]  ;;  %v3040_v28 = vld [vmem:[%s4331_s10 + $0x38] sm:$0xff]  ;;  %v4418_v30 = vld [vmem:[%s4318_s23 + $0x30] sm:$0xff]  ;;  %s2732_s10 = scalar_lea.sflag [#allocation4], %s4314_s17  ;;  %p4742_p9 = scmp.ne.s32.totalorder %s4740_s24, 0 }
 0x116   : > { %3340 = vmatpush3.bf16.msra.mxu0 %v3337_v6  ;;  %3179 = vmatprep.mubr.msk.f32.mxu0 %vm567_vm0, %v4364_v8  ;;  %v3385_v26 = vpack.c.bf16 %v4402_v25, %v4399_v24  ;;  %v3401_v29 = vpack.c.bf16 %v3040_v28, %v3039_v27  ;;  %v4421_v31 = vld [vmem:[%s4318_s23 + $0x38] sm:$0xff]  ;;  %v551_v33 = vld [vmem:[#allocation11] sm:$0xff]  ;;  %v552_v34 = vld [vmem:[#allocation11 + $0x8] sm:$0xff]  ;;  %p3809_p5 = scmp.lt.s32.totalorder %s3807_s30, %s3801_s22 }
 0x117   : > { %3346 = vmatprep.subr.bf16.mxu0 %v3337_v6  ;;  %v3409_v32 = vpack.c.bf16 %v4421_v31, %v4418_v30  ;;  %v4437_v35 = vpack.c.bf16 %v552_v34, %v551_v33  ;;  %v555_v36 = vld [vmem:[#allocation14] sm:$0xff]  ;;  %v556_v37 = vld [vmem:[#allocation14 + $0x8] sm:$0xff]  ;;  %p3803_p3 = pnand %p3802_p2, %p4742_p9 }
 0x118   : > { %v4440_v40 = vpack.c.bf16 %v556_v37, %v555_v36  ;;  %v559_v63 = vld [vmem:[%s4325_s16] sm:$0xff]  ;;  %v560_v0 = vld [vmem:[%s4325_s16 + $0x8] sm:$0xff]  ;;  %p3810_p4 = por %p3809_p5, %p3808_p1 }
 0x119   : > { %3180 = vmatmul.mubr.msk.f32.vlgmr.msra.gmra.mrb[2].mxu0 %vm567_vm0, %v550_v13  ;;  %3342 = vmatprep.subr.bf16.mxu1 %v4437_v35  ;;  %v563_v1 = vsub.f32 %v4352_v4, %v559_v63  ;;  %p3804_p10 = pneg %p3803_p3 }
 0x11a   : > { %3348 = vmatpush3.bf16.msra.mxu0 %v3337_v6  ;;  %3193 = vmatprep.mubr.msk.f32.mxu0 %vm567_vm0, %v553_v15 }
 0x11b   : > { %3354 = vmatprep.subr.bf16.mxu0 %v3353_v16  ;;  %v565_v3 = vmul.f32 %v563_v1, %v563_v1  ;;  %p3811_p0 = pnand %p3810_p4, %p3804_p10 }
 0x11d   : > { %3194 = vmatmul.mubr.msk.f32.vlgmr.msra.gmra.mrb[4].mxu0 %vm567_vm0, %v554_v19  ;;  %v568_v9 = vsel %vm567_vm0, %v565_v3, 0.0 }
 0x11e   : > { %3356 = vmatpush3.bf16.msra.mxu0 %v3353_v16  ;;  %3207 = vmatprep.mubr.msk.f32.mxu0 %vm567_vm0, %v4347_v2 }
 0x11f   : > { %3362 = vmatprep.subr.bf16.mxu0 %v3361_v20 }
 0x121   : > { %3208 = vmatmul.mubr.msk.f32.vlgmr.msra.gmra.mrb[6].mxu0 %vm567_vm0, %v4359_v7 }
 0x122   : > { %3364 = vmatpush3.bf16.msra.mxu0 %v3361_v20  ;;  %3221 = vmatprep.mubr.msk.f32.mxu0 %vm567_vm0, %v4364_v8 }
 0x123   : > { %3370 = vmatprep.subr.bf16.mxu0 %v3361_v20 }
 0x125   : > { %3222 = vmatmul.mubr.msk.f32.vlgmr.msra.gmra.mrb[8].mxu0 %vm567_vm0, %v550_v13 }
 0x126   : > { %3372 = vmatpush3.bf16.msra.mxu0 %v3361_v20  ;;  %3235 = vmatprep.mubr.msk.f32.mxu0 %vm567_vm0, %v553_v15  ;;  %v3002_v20 = vld [vmem:[%s4325_s16 + $0x18] sm:$0xff] }
 0x127   : > { %3378 = vmatprep.subr.bf16.mxu0 %v3377_v23  ;;  %v1122_v22 = vsub.f32 %v4381_v18, %v3002_v20 }
 0x129   : > { %3236 = vmatmul.mubr.msk.f32.vlgmr.msra.gmra.mrb[10].mxu0 %vm567_vm0, %v554_v19 }
 0x12a   : > { %3380 = vmatpush3.bf16.msra.mxu0 %v3377_v23  ;;  %3249 = vmatprep.mubr.msk.f32.mxu0 %vm567_vm0, %v4347_v2 }
 0x12b   : > { %3386 = vmatprep.subr.bf16.mxu0 %v3385_v26 }
 0x12d   : > { %3250 = vmatmul.mubr.msk.f32.vlgmr.msra.gmra.mrb[12].mxu0 %vm567_vm0, %v4359_v7 }
 0x12e   : > { %3388 = vmatpush3.bf16.msra.mxu0 %v3385_v26  ;;  %3263 = vmatprep.mubr.msk.f32.mxu0 %vm567_vm0, %v4364_v8 }
 0x12f   : > { %3394 = vmatprep.subr.bf16.mxu0 %v3385_v26 }
 0x131   : > { %3264 = vmatmul.mubr.msk.f32.vlgmr.msra.gmra.mrb[14].mxu0 %vm567_vm0, %v550_v13 }
 0x132   : > { %3396 = vmatpush3.bf16.msra.mxu0 %v3385_v26  ;;  %3277 = vmatprep.mubr.msk.f32.mxu0 %vm567_vm0, %v553_v15 }
 0x133   : > { %3402 = vmatprep.subr.bf16.mxu0 %v3401_v29 }
 0x135   : > { %3278 = vmatmul.mubr.msk.f32.vlgmr.msra.gmra.mrb[16].mxu0 %vm567_vm0, %v554_v19 }
 0x136   : > { %3404 = vmatpush3.bf16.msra.mxu0 %v3401_v29  ;;  %3291 = vmatprep.mubr.msk.f32.mxu0 %vm567_vm0, %v4347_v2  ;;  %v564_v2 = vsub.f32 %v4355_v5, %v560_v0 }
 0x137   : > { %3410 = vmatprep.subr.bf16.mxu0 %v3409_v32 }
 0x138   : > { %v566_v6 = vmul.f32 %v564_v2, %v564_v2 }
 0x139   : > { %3292 = vmatmul.mubr.msk.f32.vlgmr.msra.gmra.mrb[18].mxu0 %vm567_vm0, %v4359_v7  ;;  %v3019_v7 = vld [vmem:[%s4325_s16 + $0x20] sm:$0xff] }
 0x13a   : > { %3412 = vmatpush3.bf16.msra.mxu0 %v3409_v32  ;;  %3305 = vmatprep.mubr.msk.f32.mxu0 %vm567_vm0, %v4364_v8  ;;  %v3020_v8 = vld [vmem:[%s4325_s16 + $0x28] sm:$0xff]  ;;  %v569_v10 = vsel %vm567_vm0, %v566_v6, 0.0  ;;  %v1660_v11 = vsub.f32 %v4399_v24, %v3019_v7  ;;  %v1124_v24 = vmul.f32 %v1122_v22, %v1122_v22 }
 0x13b   : > { %3418 = vmatprep.subr.bf16.mxu0 %v3409_v32  ;;  %v1661_v12 = vsub.f32 %v4402_v25, %v3020_v8 }
 0x13c   : > { %v1126_v26 = vsel %vm567_vm0, %v1124_v24, 0.0 }
 0x13d   : > { %3306 = vmatmul.mubr.msk.f32.vlgmr.msra.gmra.mrb[20].mxu0 %vm567_vm0, %v550_v13  ;;  %v570_v13 = vadd.f32 %v569_v10, %v568_v9 }
 0x13e   : > { %3420 = vmatpush3.bf16.msra.mxu0 %v3409_v32  ;;  %3319 = vmatprep.mubr.msk.f32.mxu0 %vm567_vm0, %v553_v15  ;;  %v1663_v15 = vmul.f32 %v1661_v12, %v1661_v12 }
 0x13f   : > { %571 = vadd.xlane.f32.xlu0 %v570_v13 }
 0x140   : > { %v1665_v5 = vsel %vm567_vm0, %v1663_v15, 0.0 }
 0x141   : > { %3320 = vmatmul.mubr.msk.f32.vlgmr.msra.gmra.mrb[22].mxu0 %vm567_vm0, %v554_v19  ;;  %v3001_v19 = vld [vmem:[%s4325_s16 + $0x10] sm:$0xff] }
 0x142   : > { %v1121_v21 = vsub.f32 %v4378_v17, %v3001_v19 }
 0x144   : > { %v1123_v23 = vmul.f32 %v1121_v21, %v1121_v21 }
 0x146   : > { %v1125_v25 = vsel %vm567_vm0, %v1123_v23, 0.0 }
 0x147   : > { %v1127_v27 = vadd.f32 %v1126_v26, %v1125_v25 }
 0x149   : > { %1128 = vadd.xlane.f32.xlu1 %v1127_v27 }
 0x1e8   : > { %v3167_v38 = vpop.f32.mrb[0].mxu0 }
 0x1e9   : > { %v654_v39 = vpop.f32.mrb[1].mxu0 }
 0x1ea   : > { %3172 = vmatprep.mubr.msk.f32.mxu1 %vm567_vm0, %v654_v39 }
 0x1eb   : > { %3173 = vmatmul.mubr.msk.f32.vlgmr.msra.gmra.mrb[0].mxu1 %vm567_vm0, %v3167_v38 }
 0x1ec   : > { %v3181_v41 = vpop.f32.mrb[2].mxu0  ;;  %3344 = vmatpush3.bf16.msra.mxu1 %v4437_v35 }
 0x1ed   : > { %v816_v42 = vpop.f32.mrb[3].mxu0  ;;  %3350 = vmatprep.subr.bf16.mxu1 %v4440_v40 }
 0x1ee   : > { %3186 = vmatprep.mubr.msk.f32.mxu1 %vm567_vm0, %v816_v42 }
 0x1ef   : > { %3187 = vmatmul.mubr.msk.f32.vlgmr.msra.gmra.mrb[2].mxu1 %vm567_vm0, %v3181_v41 }
 0x1f0   : > { %v3195_v43 = vpop.f32.mrb[4].mxu0  ;;  %3352 = vmatpush3.bf16.msra.mxu1 %v4440_v40 }
 0x1f1   : > { %v978_v44 = vpop.f32.mrb[5].mxu0  ;;  %3358 = vmatprep.subr.bf16.mxu1 %v4375_v14 }
 0x1f2   : > { %3200 = vmatprep.mubr.msk.f32.mxu1 %vm567_vm0, %v978_v44 }
 0x1f3   : > { %3201 = vmatmul.mubr.msk.f32.vlgmr.msra.gmra.mrb[4].mxu1 %vm567_vm0, %v3195_v43 }
 0x1f4   : > { %v3209_v45 = vpop.f32.mrb[6].mxu0  ;;  %3360 = vmatpush3.bf16.msra.mxu1 %v4375_v14 }
 0x1f5   : > { %v1205_v46 = vpop.f32.mrb[7].mxu0  ;;  %3366 = vmatprep.subr.bf16.mxu1 %v4437_v35 }
 0x1f6   : > { %3214 = vmatprep.mubr.msk.f32.mxu1 %vm567_vm0, %v1205_v46 }
 0x1f7   : > { %3215 = vmatmul.mubr.msk.f32.vlgmr.msra.gmra.mrb[6].mxu1 %vm567_vm0, %v3209_v45 }
 0x1f8   : > { %v3223_v47 = vpop.f32.mrb[8].mxu0  ;;  %3368 = vmatpush3.bf16.msra.mxu1 %v4437_v35 }
 0x1f9   : > { %v1361_v48 = vpop.f32.mrb[9].mxu0  ;;  %3374 = vmatprep.subr.bf16.mxu1 %v4440_v40 }
 0x1fa   : > { %3228 = vmatprep.mubr.msk.f32.mxu1 %vm567_vm0, %v1361_v48 }
 0x1fb   : > { %3229 = vmatmul.mubr.msk.f32.vlgmr.msra.gmra.mrb[8].mxu1 %vm567_vm0, %v3223_v47 }
 0x1fc   : > { %v3237_v49 = vpop.f32.mrb[10].mxu0  ;;  %3376 = vmatpush3.bf16.msra.mxu1 %v4440_v40 }
 0x1fd   : > { %v1517_v50 = vpop.f32.mrb[11].mxu0  ;;  %3382 = vmatprep.subr.bf16.mxu1 %v4375_v14 }
 0x1fe   : > { %3242 = vmatprep.mubr.msk.f32.mxu1 %vm567_vm0, %v1517_v50 }
 0x1ff   : > { %3243 = vmatmul.mubr.msk.f32.vlgmr.msra.gmra.mrb[10].mxu1 %vm567_vm0, %v3237_v49 }
 0x200   : > { %v3251_v51 = vpop.f32.mrb[12].mxu0  ;;  %3384 = vmatpush3.bf16.msra.mxu1 %v4375_v14 }
 0x201   : > { %v1744_v52 = vpop.f32.mrb[13].mxu0  ;;  %3390 = vmatprep.subr.bf16.mxu1 %v4437_v35 }
 0x202   : > { %3256 = vmatprep.mubr.msk.f32.mxu1 %vm567_vm0, %v1744_v52  ;;  %v3037_v52 = vld [vmem:[%s4325_s16 + $0x30] sm:$0xff] }
 0x203   : > { %3257 = vmatmul.mubr.msk.f32.vlgmr.msra.gmra.mrb[12].mxu1 %vm567_vm0, %v3251_v51 }
 0x204   : > { %v3265_v53 = vpop.f32.mrb[14].mxu0  ;;  %3392 = vmatpush3.bf16.msra.mxu1 %v4437_v35 }
 0x205   : > { %v1900_v54 = vpop.f32.mrb[15].mxu0  ;;  %3398 = vmatprep.subr.bf16.mxu1 %v4440_v40 }
 0x206   : > { %3270 = vmatprep.mubr.msk.f32.mxu1 %vm567_vm0, %v1900_v54  ;;  %v3038_v54 = vld [vmem:[%s4325_s16 + $0x38] sm:$0xff]  ;;  %s4578_s16 = scalar_lea.hbm %s4741_s20, %s3055_s19 }
 0x207   : > { %3271 = vmatmul.mubr.msk.f32.vlgmr.msra.gmra.mrb[14].mxu1 %vm567_vm0, %v3265_v53  ;;  %v2200_v0 = vsub.f32 %v4421_v31, %v3038_v54 }
 0x208   : > { %v3279_v55 = vpop.f32.mrb[16].mxu0  ;;  %3400 = vmatpush3.bf16.msra.mxu1 %v4440_v40 }
 0x209   : > { %v2056_v56 = vpop.f32.mrb[17].mxu0  ;;  %3406 = vmatprep.subr.bf16.mxu1 %v4375_v14  ;;  %v2202_v15 = vmul.f32 %v2200_v0, %v2200_v0 }
 0x20a   : > { %3284 = vmatprep.mubr.msk.f32.mxu1 %vm567_vm0, %v2056_v56 }
 0x20b   : > { %3285 = vmatmul.mubr.msk.f32.vlgmr.msra.gmra.mrb[16].mxu1 %vm567_vm0, %v3279_v55 }
 0x20c   : > { %v3293_v57 = vpop.f32.mrb[18].mxu0  ;;  %3408 = vmatpush3.bf16.msra.mxu1 %v4375_v14  ;;  %v1662_v14 = vmul.f32 %v1660_v11, %v1660_v11 }
 0x20d   : > { %v2283_v58 = vpop.f32.mrb[19].mxu0  ;;  %3414 = vmatprep.subr.bf16.mxu1 %v4437_v35 }
 0x20e   : > { %3298 = vmatprep.mubr.msk.f32.mxu1 %vm567_vm0, %v2283_v58  ;;  %v1664_v4 = vsel %vm567_vm0, %v1662_v14, 0.0 }
 0x20f   : > { %3299 = vmatmul.mubr.msk.f32.vlgmr.msra.gmra.mrb[18].mxu1 %vm567_vm0, %v3293_v57  ;;  %v1666_v16 = vadd.f32 %v1665_v5, %v1664_v4 }
 0x210   : > { %v3307_v59 = vpop.f32.mrb[20].mxu0  ;;  %3416 = vmatpush3.bf16.msra.mxu1 %v4437_v35 }
 0x211   : > { %v2439_v60 = vpop.f32.mrb[21].mxu0  ;;  %3422 = vmatprep.subr.bf16.mxu1 %v4440_v40  ;;  %1667 = vadd.xlane.f32.xlu0 %v1666_v16 }
 0x212   : > { %3312 = vmatprep.mubr.msk.f32.mxu1 %vm567_vm0, %v2439_v60  ;;  %v2199_v60 = vsub.f32 %v4418_v30, %v3037_v52 }
 0x213   : > { %3313 = vmatmul.mubr.msk.f32.vlgmr.msra.gmra.mrb[20].mxu1 %vm567_vm0, %v3307_v59 }
 0x214   : > { %v3321_v61 = vpop.f32.mrb[22].mxu0  ;;  %3424 = vmatpush3.bf16.msra.mxu1 %v4440_v40  ;;  %v2201_v14 = vmul.f32 %v2199_v60, %v2199_v60 }
 0x215   : > { %v2595_v62 = vpop.f32.mrb[23].mxu0 }
 0x216   : > { %3326 = vmatprep.mubr.msk.f32.mxu1 %vm567_vm0, %v2595_v62 }
 0x217   : > { %3327 = vmatmul.mubr.msk.f32.vlgmr.msra.gmra.mrb[22].mxu1 %vm567_vm0, %v3321_v61 }
 0x2be   : > { %v3174_v28 = vpop.f32.mrb[0].mxu1 }
 0x2bf   : > { %v735_v29 = vpop.f32.mrb[1].mxu1 }
 0x2c2   : > { %v3188_v32 = vpop.f32.mrb[2].mxu1 }
 0x2c3   : > { %v897_v33 = vpop.f32.mrb[3].mxu1  ;;  %v1069_v35 = vmul.f32 %v3188_v32, %v3188_v32 }
 0x2c4   : > { %v1068_v38 = vmul.f32 %v897_v33, %v897_v33 }
 0x2c6   : > { %v3202_v34 = vpop.f32.mrb[4].mxu1 }
 0x2c7   : > { %v1071_v36 = vmul.f32 %v3202_v34, %v3202_v34  ;;  %v1059_v37 = vpop.f32.mrb[5].mxu1 }
 0x2c8   : > { %v1070_v17 = vmul.f32 %v1059_v37, %v1059_v37 }
 0x2c9   : > { %v1073_v39 = vadd.f32 %v1071_v36, %v1069_v35 }
 0x2ca   : > { %v1072_v18 = vadd.f32 %v1070_v17, %v1068_v38  ;;  %v4505_v40 = vpop.f32.mrb[6].mxu1 }
 0x2cb   : > { %v1075_v41 = vadd.f32 1e-06, %v1073_v39  ;;  %v4507_v42 = vpop.f32.mrb[7].mxu1 }
 0x2cc   : > { %v1074_v43 = vadd.f32 1e-06, %v1072_v18 }
 0x2cd   : > { %3555 = vrsqrt.f32 %v1075_v41  ;;  %vm1085_vm1 = vcmp.eq.f32.partialorder %v1075_v41, inf  ;;  %vm1087_vm2 = vcmp.eq.f32.partialorder %v1075_v41, 0.0  ;;  %v1088_v2 = vand.u32 2147483648, %v1075_v41 }
 0x2ce   : > { %3557 = vrsqrt.f32 %v1074_v43  ;;  %v3230_v44 = vpop.f32.mrb[8].mxu1  ;;  %vm1078_vm3 = vcmp.eq.f32.partialorder %v1074_v43, inf  ;;  %v1081_v6 = vand.u32 2147483648, %v1074_v43  ;;  %vm1080_vm4 = vcmp.eq.f32.partialorder %v1074_v43, 0.0 }
 0x2cf   : > { %v1442_v45 = vpop.f32.mrb[9].mxu1  ;;  %v1608_v47 = vmul.f32 %v3230_v44, %v3230_v44 }
 0x2d0   : > { %v1607_v50 = vmul.f32 %v1442_v45, %v1442_v45 }
 0x2d2   : > { %v3244_v46 = vpop.f32.mrb[10].mxu1 }
 0x2d3   : > { %v1610_v48 = vmul.f32 %v3244_v46, %v3244_v46  ;;  %v1598_v49 = vpop.f32.mrb[11].mxu1 }
 0x2d4   : > { %v1609_v51 = vmul.f32 %v1598_v49, %v1598_v49 }
 0x2d5   : > { %v1612_v53 = vadd.f32 %v1610_v48, %v1608_v47 }
 0x2d6   : > { %v1611_v55 = vadd.f32 %v1609_v51, %v1607_v50  ;;  %v4511_v56 = vpop.f32.mrb[12].mxu1 }
 0x2d7   : > { %v3556_v57 = vpop.eup %3555  ;;  %v4513_v58 = vadd.f32 1e-06, %v1612_v53  ;;  %v4515_v59 = vpop.f32.mrb[13].mxu1 }
 0x2d8   : > { %v3558_v61 = vpop.eup %3557  ;;  %v4518_v62 = vadd.f32 1e-06, %v1611_v55  ;;  %v1084_v63 = vmul.f32 %v3556_v57, %v1075_v41 }
 0x2d9   : > { %3559 = vrsqrt.f32 %v4513_v58  ;;  %v1077_v1 = vmul.f32 %v3558_v61, %v1074_v43  ;;  %vm1624_vm5 = vcmp.eq.f32.partialorder %v4513_v58, inf  ;;  %vm1626_vm6 = vcmp.eq.f32.partialorder %v4513_v58, 0.0 }
 0x2da   : > { %3561 = vrsqrt.f32 %v4518_v62  ;;  %v3272_v3 = vpop.f32.mrb[14].mxu1  ;;  %v1086_v7 = vsel %vm1085_vm1, %v1075_v41, %v1084_v63  ;;  %vm1617_vm7 = vcmp.eq.f32.partialorder %v4518_v62, inf  ;;  %v1627_v41 = vand.u32 2147483648, %v4513_v58 }
 0x2db   : > { %v1981_v8 = vpop.f32.mrb[15].mxu1  ;;  %v1079_v30 = vsel %vm1078_vm3, %v1074_v43, %v1077_v1  ;;  %v1089_v9 = vsel %vm1087_vm2, %v1088_v2, %v1086_v7  ;;  %v2147_v4 = vmul.f32 %v3272_v3, %v3272_v3  ;;  %v1620_v45 = vand.u32 2147483648, %v4518_v62 }
 0x2dc   : > { %v1082_v10 = vsel %vm1080_vm4, %v1081_v6, %v1079_v30  ;;  %v1091_v11 = vmul.f32 %v3174_v28, %v1089_v9  ;;  %v2146_v20 = vmul.f32 %v1981_v8, %v1981_v8  ;;  %v2203_v28 = vsel %vm567_vm0, %v2201_v14, 0.0 }
 0x2dd   : > { %v1090_v12 = vmul.f32 %v1082_v10, %v735_v29  ;;  %v2204_v29 = vsel %vm567_vm0, %v2202_v15, 0.0  ;;  %vm1619_vm8 = vcmp.eq.f32.partialorder %v4518_v62, 0.0 }
 0x2de   : > { %v3286_v13 = vpop.f32.mrb[16].mxu1  ;;  %v1093_v31 = vand.u32 2147483647, %v1091_v11  ;;  %v2205_v52 = vadd.f32 %v2204_v29, %v2203_v28 }
 0x2df   : > { %v2149_v5 = vmul.f32 %v3286_v13, %v3286_v13  ;;  %v2137_v16 = vpop.f32.mrb[17].mxu1  ;;  %v1092_v19 = vand.u32 2147483647, %v1090_v12 }
 0x2e0   : > { %v2148_v21 = vmul.f32 %v2137_v16, %v2137_v16  ;;  %v1095_v22 = vadd.f32 1e-07, %v1093_v31  ;;  %v572_v16 = vpop.xlane.xlu0 %571 }
 0x2e1   : > { %v2151_v23 = vadd.f32 %v2149_v5, %v2147_v4  ;;  %v1094_v24 = vadd.f32 1e-07, %v1092_v19 }
 0x2e2   : > { %v2150_v25 = vadd.f32 %v2148_v21, %v2146_v20  ;;  %v4523_v26 = vpop.f32.mrb[18].mxu1  ;;  %v1097_v27 = vmul.f32 %v1095_v22, %v1095_v22  ;;  %v573_v21 = vrot.slane %v572_v16, 4 }
 0x2e3   : > { %v3560_v32 = vpop.eup %3559  ;;  %v4527_v33 = vadd.f32 1e-06, %v2151_v23  ;;  %v4529_v34 = vpop.f32.mrb[19].mxu1  ;;  %v1096_v35 = vmul.f32 %v1094_v24, %v1094_v24 }
 0x2e4   : > { %v3562_v36 = vpop.eup %3561  ;;  %v2152_v37 = vadd.f32 1e-06, %v2150_v25  ;;  %v1099_v38 = vsel %vm567_vm0, %v1097_v27, 0.0  ;;  %v1623_v17 = vmul.f32 %v3560_v32, %v4513_v58  ;;  %v574_v27 = vadd.f32 %v573_v21, %v572_v16 }
 0x2e5   : > { %3563 = vrsqrt.f32 %v4527_v33  ;;  %v1098_v39 = vsel %vm567_vm0, %v1096_v35, 0.0  ;;  %v1616_v18 = vmul.f32 %v3562_v36, %v4518_v62  ;;  %vm2163_vm10 = vcmp.eq.f32.partialorder %v4527_v33, inf }
 0x2e6   : > { %3565 = vrsqrt.f32 %v2152_v37  ;;  %v3314_v43 = vpop.f32.mrb[20].mxu1  ;;  %v1100_v44 = vadd.f32 %v1099_v38, %v1098_v39  ;;  %v1625_v46 = vsel %vm1624_vm5, %v4513_v58, %v1623_v17  ;;  %vm2156_vm9 = vcmp.eq.f32.partialorder %v2152_v37, inf }
 0x2e7   : > { %v2520_v47 = vpop.f32.mrb[21].mxu1  ;;  %v1618_v48 = vsel %vm1617_vm7, %v4518_v62, %v1616_v18  ;;  %v1628_v49 = vsel %vm1626_vm6, %v1627_v41, %v1625_v46  ;;  %v2686_v57 = vmul.f32 %v3314_v43, %v3314_v43  ;;  %v2159_v10 = vand.u32 2147483648, %v2152_v37 }
 0x2e8   : > { %1101 = vadd.xlane.f32.xlu0 %v1100_v44  ;;  %v1621_v50 = vsel %vm1619_vm8, %v1620_v45, %v1618_v48  ;;  %v1630_v51 = vmul.f32 %v4505_v40, %v1628_v49  ;;  %v2685_v0 = vmul.f32 %v2520_v47, %v2520_v47  ;;  %v2166_v31 = vand.u32 2147483648, %v4527_v33 }
 0x2e9   : > { %v1629_v53 = vmul.f32 %v1621_v50, %v4507_v42  ;;  %vm2165_vm11 = vcmp.eq.f32.partialorder %v4527_v33, 0.0  ;;  %vm2158_vm12 = vcmp.eq.f32.partialorder %v2152_v37, 0.0  ;;  %v575_v38 = vrot.slane %v574_v27, 2 }
 0x2ea   : > { %v3328_v54 = vpop.f32.mrb[22].mxu1  ;;  %v1632_v55 = vand.u32 2147483647, %v1630_v51 }
 0x2eb   : > { %v2688_v60 = vmul.f32 %v3328_v54, %v3328_v54  ;;  %v2676_v61 = vpop.f32.mrb[23].mxu1  ;;  %v1631_v63 = vand.u32 2147483647, %v1629_v53  ;;  %v576_v47 = vadd.f32 %v575_v38, %v574_v27 }
 0x2ec   : > { %v2687_v1 = vmul.f32 %v2676_v61, %v2676_v61  ;;  %v1634_v2 = vadd.f32 1e-07, %v1632_v55  ;;  %2206 = vadd.xlane.f32.xlu0 %v2205_v52 }
 0x2ed   : > { %v2690_v62 = vadd.f32 %v2688_v60, %v2686_v57  ;;  %v1633_v58 = vadd.f32 1e-07, %v1631_v63  ;;  %v577_v50 = vrot.slane %v576_v47, 1 }
 0x2ee   : > { %v2689_v3 = vadd.f32 %v2687_v1, %v2685_v0  ;;  %v1636_v6 = vmul.f32 %v1634_v2, %v1634_v2  ;;  %v1129_v0 = vpop.xlane.xlu1 %1128  ;;  %v1668_v1 = vpop.xlane.xlu0 %1667 }
 0x2ef   : > { %v3564_v7 = vpop.eup %3563  ;;  %v2692_v8 = vadd.f32 1e-06, %v2690_v62  ;;  %v1635_v40 = vmul.f32 %v1633_v58, %v1633_v58  ;;  %v578_v53 = vadd.f32 %v577_v50, %v576_v47 }
 0x2f0   : > { %v3566_v42 = vpop.eup %3565  ;;  %v2691_v30 = vadd.f32 1e-06, %v2689_v3  ;;  %v1638_v9 = vsel %vm567_vm0, %v1636_v6, 0.0  ;;  %v2162_v11 = vmul.f32 %v3564_v7, %v4527_v33  ;;  %v1669_v3 = vrot.slane %v1668_v1, 4 }
 0x2f1   : > { %3567 = vrsqrt.f32 %v2692_v8  ;;  %v1637_v12 = vsel %vm567_vm0, %v1635_v40, 0.0  ;;  %v2155_v13 = vmul.f32 %v3566_v42, %v2152_v37  ;;  %vm2702_vm13 = vcmp.eq.f32.partialorder %v2692_v8, inf  ;;  %3425 = vpush %v578_v53 }
 0x2f2   : > { %3569 = vrsqrt.f32 %v2691_v30  ;;  %v1639_v14 = vadd.f32 %v1638_v9, %v1637_v12  ;;  %v2164_v15 = vsel %vm2163_vm10, %v4527_v33, %v2162_v11  ;;  %vm2695_vm14 = vcmp.eq.f32.partialorder %v2691_v30, inf }
 0x2f3   : > { %v2157_v4 = vsel %vm2156_vm9, %v2152_v37, %v2155_v13  ;;  %v2167_v5 = vsel %vm2165_vm11, %v2166_v31, %v2164_v15  ;;  %v2705_v39 = vand.u32 2147483648, %v2692_v8  ;;  %v2698_v18 = vand.u32 2147483648, %v2691_v30 }
 0x2f4   : > { %1640 = vadd.xlane.f32.xlu1 %v1639_v14  ;;  %v2160_v19 = vsel %vm2158_vm12, %v2159_v10, %v2157_v4  ;;  %v2169_v20 = vmul.f32 %v4511_v56, %v2167_v5  ;;  %vm2704_vm15 = vcmp.eq.f32.partialorder %v2692_v8, 0.0  ;;  %vm2697_vm1 = vcmp.eq.f32.partialorder %v2691_v30, 0.0 }
 0x2f5   : > { %v2168_v22 = vmul.f32 %v2160_v19, %v4515_v59  ;;  %v1670_v40 = vadd.f32 %v1669_v3, %v1668_v1 }
 0x2f6   : > { %v2171_v23 = vand.u32 2147483647, %v2169_v20 }
 0x2f7   : > { %v2170_v24 = vand.u32 2147483647, %v2168_v22  ;;  %v1671_v10 = vrot.slane %v1670_v40, 2 }
 0x2f8   : > { %v2173_v25 = vadd.f32 1e-07, %v2171_v23 }
 0x2f9   : > { %v2172_v28 = vadd.f32 1e-07, %v2170_v24  ;;  %v1672_v4 = vadd.f32 %v1671_v10, %v1670_v40 }
 0x2fa   : > { %v2175_v29 = vmul.f32 %v2173_v25, %v2173_v25 }
 0x2fb   : > { %v3568_v32 = vpop.eup %3567  ;;  %v2174_v35 = vmul.f32 %v2172_v28, %v2172_v28  ;;  %v1673_v20 = vrot.slane %v1672_v4, 1 }
 0x2fc   : > { %v3570_v33 = vpop.eup %3569  ;;  %v2177_v36 = vsel %vm567_vm0, %v2175_v29, 0.0  ;;  %v2701_v37 = vmul.f32 %v3568_v32, %v2692_v8 }
 0x2fd   : > { %v2176_v17 = vsel %vm567_vm0, %v2174_v35, 0.0  ;;  %v2694_v56 = vmul.f32 %v3570_v33, %v2691_v30  ;;  %v1674_v24 = vadd.f32 %v1673_v20, %v1672_v4 }
 0x2fe   : > { %v2178_v59 = vadd.f32 %v2177_v36, %v2176_v17  ;;  %v2703_v41 = vsel %vm2702_vm13, %v2692_v8, %v2701_v37 }
 0x2ff   : > { %v2696_v43 = vsel %vm2695_vm14, %v2691_v30, %v2694_v56  ;;  %v2706_v44 = vsel %vm2704_vm15, %v2705_v39, %v2703_v41 }
 0x300   : > { %2179 = vadd.xlane.f32.xlu1 %v2178_v59  ;;  %v2699_v45 = vsel %vm2697_vm1, %v2698_v18, %v2696_v43  ;;  %v2708_v46 = vmul.f32 %v4523_v26, %v2706_v44  ;;  %v1130_v26 = vrot.slane %v1129_v0, 4 }
 0x301   : > { %v2707_v48 = vmul.f32 %v2699_v45, %v4529_v34 }
 0x302   : > { %v2710_v49 = vand.u32 2147483647, %v2708_v46  ;;  %v1131_v2 = vadd.f32 %v1130_v26, %v1129_v0 }
 0x303   : > { %v2709_v51 = vand.u32 2147483647, %v2707_v48 }
 0x304   : > { %v2712_v52 = vadd.f32 1e-07, %v2710_v49  ;;  %v1132_v34 = vrot.slane %v1131_v2, 2 }
 0x305   : > { %v2711_v54 = vadd.f32 1e-07, %v2709_v51 }
 0x306   : > { %v2714_v55 = vmul.f32 %v2712_v52, %v2712_v52  ;;  %v1133_v6 = vadd.f32 %v1132_v34, %v1131_v2 }
 0x307   : > { %v2713_v57 = vmul.f32 %v2711_v54, %v2711_v54 }
 0x308   : > { %v2716_v60 = vsel %vm567_vm0, %v2714_v55, 0.0  ;;  %v1134_v42 = vrot.slane %v1133_v6, 1 }
 0x309   : > { %v2715_v61 = vsel %vm567_vm0, %v2713_v57, 0.0 }
 0x30a   : > { %v2717_v63 = vadd.f32 %v2716_v60, %v2715_v61  ;;  %v1135_v11 = vadd.f32 %v1134_v42, %v1133_v6 }
 0x30c   : > { %2718 = vadd.xlane.f32.xlu1 %v2717_v63 }
 0x322   : > { %s3426_s28 = spop %3425 }
 0x323   : > { %v580_v45 = vstv %s3426_s28 }
 0x375   : > { %v1102_v62 = vpop.xlane.xlu0 %1101 }
 0x376   : > { %v1103_v58 = vrot.slane %v1102_v62, 4 }
 0x378   : > { %v1104_v7 = vadd.f32 %v1103_v58, %v1102_v62 }
 0x379   : > { %v2207_v13 = vpop.xlane.xlu0 %2206 }
 0x37a   : > { %v1105_v8 = vrot.slane %v1104_v7, 2  ;;  %v2208_v15 = vrot.slane %v2207_v13, 4 }
 0x37c   : > { %v1106_v30 = vadd.f32 %v1105_v8, %v1104_v7  ;;  %v2209_v19 = vadd.f32 %v2208_v15, %v2207_v13 }
 0x37e   : > { %v1107_v9 = vrot.slane %v1106_v30, 1  ;;  %v2210_v23 = vrot.slane %v2209_v19, 2 }
 0x380   : > { %v1108_v12 = vadd.f32 %v1107_v9, %v1106_v30  ;;  %v2211_v29 = vadd.f32 %v2210_v23, %v2209_v19 }
 0x381   : > { %v1641_v31 = vpop.xlane.xlu1 %1640 }
 0x382   : > { %v1642_v14 = vrot.slane %v1641_v31, 4  ;;  %3427 = vpush %v1108_v12  ;;  %v2212_v33 = vrot.slane %v2211_v29, 1 }
 0x383   : > { %3429 = vpush %v1135_v11 }
 0x384   : > { %v1643_v5 = vadd.f32 %v1642_v14, %v1641_v31  ;;  %v2213_v38 = vadd.f32 %v2212_v33, %v2211_v29 }
 0x386   : > { %v1644_v16 = vrot.slane %v1643_v5, 2 }
 0x388   : > { %v1645_v21 = vadd.f32 %v1644_v16, %v1643_v5 }
 0x38a   : > { %v1646_v22 = vrot.slane %v1645_v21, 1 }
 0x38c   : > { %v1647_v25 = vadd.f32 %v1646_v22, %v1645_v21 }
 0x38d   : > { %v2180_v27 = vpop.xlane.xlu1 %2179 }
 0x38e   : > { %v2181_v28 = vrot.slane %v2180_v27, 4  ;;  %3431 = vpush %v1647_v25 }
 0x38f   : > { %3433 = vpush %v1674_v24 }
 0x390   : > { %v2182_v32 = vadd.f32 %v2181_v28, %v2180_v27 }
 0x392   : > { %v2183_v35 = vrot.slane %v2182_v32, 2 }
 0x394   : > { %v2184_v36 = vadd.f32 %v2183_v35, %v2182_v32 }
 0x396   : > { %v2185_v37 = vrot.slane %v2184_v36, 1 }
 0x398   : > { %v2186_v17 = vadd.f32 %v2185_v37, %v2184_v36 }
 0x399   : > { %v2719_v56 = vpop.xlane.xlu1 %2718 }
 0x39a   : > { %v2720_v39 = vrot.slane %v2719_v56, 4  ;;  %3435 = vpush %v2186_v17 }
 0x39b   : > { %3437 = vpush %v2213_v38 }
 0x39c   : > { %v2721_v59 = vadd.f32 %v2720_v39, %v2719_v56 }
 0x39e   : > { %v2722_v18 = vrot.slane %v2721_v59, 2 }
 0x3a0   : > { %v2723_v41 = vadd.f32 %v2722_v18, %v2721_v59 }
 0x3a2   : > { %v2724_v43 = vrot.slane %v2723_v41, 1 }
 0x3a4   : > { %v2725_v44 = vadd.f32 %v2724_v43, %v2723_v41 }
 0x3a6   : > { %3439 = vpush %v2725_v44 }
 0x3b3   : > { %s4563_s13 = spop %3427 }
 0x3b4   : > { %s3430_s1 = spop %3429 }
 0x3b5   : > { %v1137_v46 = vstv %s3430_s1 }
 0x3b6   : > { %v1138_v47 = vadd.f32 %v1137_v46, %v580_v45 }
 0x3bf   : > { %s4565_s21 = spop %3431 }
 0x3c0   : > { %s3434_s11 = spop %3433 }
 0x3c1   : > { %v1676_v48 = vstv %s3434_s11 }
 0x3c2   : > { %v1677_v49 = vadd.f32 %v1676_v48, %v1138_v47 }
 0x3cb   : > { %s4569_s6 = spop %3435 }
 0x3cc   : > { %s3438_s5 = spop %3437 }
 0x3cd   : > { %v2215_v50 = vstv %s3438_s5 }
 0x3ce   : > { %v2216_v51 = vadd.f32 %v2215_v50, %v1677_v49 }
 0x3d0   : > { %2729 = vst [vmem:[%s534_s25] sm:$0xff] %v2216_v51 }
 0x3d1   : > { %3814 = shalt.err (!%p3811_p0)
}
 0x3d2   : > { %s3815_s28 = scalar_lea.hbm %s4578_s16, 128  ;;  %s3819_s25 = scalar_lea.hbm %s4741_s20, 256 }
 0x3d3   : > { %p3816_p12 = scmp.ne.s32.totalorder %s4578_s16, %s3815_s28  ;;  %p3820_p6 = scmp.lt.u32.totalorder %s4578_s16, %s4741_s20 }
 0x3d4   : > { %p3821_p8 = scmp.lt.u32.totalorder %s3819_s25, %s3815_s28  ;;  %p3823_p2 = scmp.lt.u32.totalorder %s3815_s28, %s4578_s16 }
 0x3d5   : > { %p3817_p11 = pnand %p3816_p12, %p4742_p9 }
 0x3d6   : > { %p3822_p7 = por %p3821_p8, %p3820_p6 }
 0x3d7   : > { %p3818_p13 = pneg %p3817_p11 }
 0x3d8   : > { %p3824_p3 = por %p3823_p2, %p3822_p7 }
 0x3da   : > { %p3825_p10 = pnand %p3824_p3, %p3818_p13 }
 0x3dc   : > { %3828 = shalt.err (!%p3825_p10)
}
 0x3dd   : > { %3467 = dma.vmem_to_hbm [thread:$0]  (%p4742_p9), %s4580_s18, 128, %s4578_s16, %s2732_s10   ;;  %v1649_v52 = vstv %s4565_s21  ;;  %v1110_v53 = vstv %s4563_s13  ;;  %v2188_v54 = vstv %s4569_s6 }
 0x3de   : > { %v1650_v55 = vadd.f32 %v1649_v52, %v1110_v53  ;;  %s541_s26 = scalar_lea.vmem [#allocation17], %s2985_s29  ;;  %s3440_s3 = spop %3439 }
 0x3df   : > { %s2763_s22 = sshll.u32 %s541_s26, 4  ;;  %v2727_v60 = vstv %s3440_s3  ;;  %s4743_s28 = sld [smem:[#allocation38_spill]]  ;;  %s4616_s22 = int_to_ptr.vmem [resolvable:$true] %s2763_s22 }
 0x3e0   : > { %v2189_v57 = vadd.f32 %v2188_v54, %v1650_v55  ;;  %s2737_s13 = scalar_lea.sflag [#allocation18], %s4314_s17  ;;  %s3829_s21 = scalar_lea.vmem %s4616_s22, 128 }
 0x3e1   : > { %p3830_p1 = scmp.ne.s32.totalorder %s4616_s22, %s3829_s21  ;;  %s3928_s29 = smov [#allocation17]  }
 0x3e2   : > { %v2728_v61 = vadd.f32 %v2727_v60, %v2189_v57  ;;  %s3833_s6 = sshll.u32 %s3928_s29, 4  ;;  %s3834_s6 = int_to_ptr.vmem [resolvable:$false] %s3833_s6 }
 0x3e3   : > { %p3831_p5 = pnand %p3830_p1, %p4742_p9  ;;  %s3835_s27 = scalar_lea.vmem %s3834_s6, 256 }
 0x3e4   : > { %2730 = vst [vmem:[%s541_s26] sm:$0xff] %v2728_v61  ;;  %p3836_p0 = scmp.lt.s32.totalorder %s4616_s22, %s3834_s6  ;;  %p3837_p12 = scmp.lt.s32.totalorder %s3835_s27, %s3829_s21 }
 0x3e5   : > { %s4614_s1 = scalar_lea.hbm %s4743_s28, %s3055_s19  ;;  %p3832_p4 = pneg %p3831_p5 }
 0x3e6   : > { %p3838_p11 = por %p3837_p12, %p3836_p0 }
 0x3e8   : > { %p3839_p13 = pnand %p3838_p11, %p3832_p4 }
 0x3ea   : > { %3842 = shalt.err (!%p3839_p13)
}
 0x3eb   : > { %s3843_s17 = scalar_lea.hbm %s4614_s1, 128  ;;  %s3847_s16 = scalar_lea.hbm %s4743_s28, 256 }
 0x3ec   : > { %p3844_p6 = scmp.ne.s32.totalorder %s4614_s1, %s3843_s17  ;;  %p3848_p2 = scmp.lt.u32.totalorder %s4614_s1, %s4743_s28 }
 0x3ed   : > { %p3849_p3 = scmp.lt.u32.totalorder %s3847_s16, %s3843_s17  ;;  %p3851_p1 = scmp.lt.u32.totalorder %s3843_s17, %s4614_s1 }
 0x3ee   : > { %p3845_p8 = pnand %p3844_p6, %p4742_p9 }
 0x3ef   : > { %p3850_p10 = por %p3849_p3, %p3848_p2 }
 0x3f0   : > { %p3846_p7 = pneg %p3845_p8 }
 0x3f1   : > { %p3852_p5 = por %p3851_p1, %p3850_p10 }
 0x3f3   : > { %p3853_p4 = pnand %p3852_p5, %p3846_p7 }
 0x3f5   : > { %3856 = shalt.err (!%p3853_p4)
}
 0x3f6   : > { %3468 = dma.vmem_to_hbm [thread:$0]  (%p4742_p9), %s4616_s22, 128, %s4614_s1, %s2737_s13  }
 0x3f7 PF: > { %s4744_s25 = sld [smem:[#allocation26_spill]]  ;;  %s4745_s5 = sld [smem:[#allocation32_spill]] }
 0x3f8   : > { %s4746_s23 = sld [smem:[#allocation27_spill]] }
 0x3fd   : > { %s2775_s26 = sand.u32 1, %s4744_s25   ;;  %p4747_p0 = scmp.ne.s32.totalorder %s4745_s5, 0 }
 0x3fe   : > { %p4748_p12 = scmp.ge.s32.totalorder %s4746_s23, 2  ;;  %s2776_s3 = scalar_lea.sflag [#allocation4], %s2775_s26 }
 0x400   : > { %p3498_p11 = pnand %p4748_p12, %p4747_p0 }
 0x402   : > { %3894 = dma.done.wait (!%p3498_p11), %s2776_s3, 128  }
 0x403   : > { %3896 = vsyncadd (!%p3498_p11), %s2776_s3, 4294967168  ;;  %s2785_s12 = scalar_lea.sflag [#allocation18], %s2775_s26 }
 0x404   : > { %3898 = dma.done.wait (!%p3498_p11), %s2785_s12, 128  }
 0x405   : > { %3900 = vsyncadd (!%p3498_p11), %s2785_s12, 4294967168  ;;  %s4749_s16 = sld [smem:[#allocation29_spill]]  ;;  %s4750_s24 = sld [smem:[#allocation31_spill]] }
 0x406   : > { %s4751_s13 = smov %s3907_s14  ;;  %s4752_s14 = smov %s3911_s15 }
 0x40b   : > { %p33_p9 = scmp.ge.s32.totalorder %s4749_s16, 4   ;;  %s4753_s15 = smov %s4750_s24 }
 0x40d   :  { %35 = sbr.rel (!%p33_p9) target bundleno = 19 (0x13), region = 171 }
 0x414   :  { %2790 = vsyncpa [#allocation3], 1 }
 0x415   :  { %2792 = vsyncpa [#allocation3 + $0x1], 1 }
 0x416   :  { %2793 = vsyncpa [#allocation6], 1 }
 0x417   :  { %2795 = vsyncpa [#allocation6 + $0x1], 1 }
 0x418   :  { %2796 = vsyncpa [#allocation9], 1 }
 0x419   :  { %2797 = vsyncpa [#allocation12], 1 }
 0x41a   :  { %2798 = vsyncpa [#allocation15], 1 }
 0x41b   :  { %2799 = vsyncpa [#allocation4], 1 }
 0x41c   :  { %2801 = vsyncpa [#allocation4 + $0x1], 1 }
 0x41d   :  { %2802 = vsyncpa [#allocation18], 1 }
 0x41e   :  { %2804 = vsyncpa [#allocation18 + $0x1], 1 }

</bundles_post_ra>
